<compile_context>
chip_gen: v7x
topology: tpu7x:2x2x1
jax: 0.10.0
libtpu: 0.0.40
codegen_flags: <defaults>
</compile_context>

<pallas_src>
import functools

import numpy as np

import jax
import jax.numpy as jnp
from jax import lax
from jax.experimental import pallas as pl
from jax.experimental.pallas import tpu as pltpu


# ----------------------------------------------------------------------------
# Main fused kernel: 4 Conv1d branches + power spectrogram + 10*log10 per tile
# ----------------------------------------------------------------------------
def _panns_fused_kernel(xzm_ref, xzh_ref, xrm_ref, xrh_ref,
                        wc_ref, bias_ref, ws_ref,
                        img_ref, mx_ref,
                        win_ref, rhs_ref,
                        *, C, H, NG, D, SCP, TM, L_valid):
    # xzm/xzh : (1, SCP, TM) / (1, SCP, 128)  zero-padded stride slab + halo
    # xrm/xrh : (1, SCP, TM) / (1, SCP, 128)  reflect-padded stride slab + halo
    # wc_ref  : (NG*H, D*SCP)   fused conv taps      bias_ref : (NG*H, 1)
    # ws_ref  : (C*2H, D*SCP)   block-diag windowed DFT taps
    # img_ref : (1, NG + C, H, TM) lane-dense output tile
    # mx_ref  : (1, 1, 1, 1)    per-(batch, tile) max of the dB image
    # win_ref : (SCP, TM + 128) scratch window     rhs_ref : (D*SCP, TM) scratch

    # ---- branch 1: CNNSpectrogram (fused Conv1d taps, zero-padded slab) ----
    win_ref[:, :TM] = xzm_ref[0]
    win_ref[:, TM:] = xzh_ref[0]
    for d in range(D):
        rhs_ref[d * SCP:(d + 1) * SCP, :] = win_ref[:, d:d + TM]
    conv = jnp.dot(wc_ref[...], rhs_ref[...],
                   preferred_element_type=jnp.float32) + bias_ref[...]
    for g in range(NG):
        img_ref[0, g] = conv[g * H:(g + 1) * H, :]

    # ---- branch 2: Spectrogram + 10*log10 (windowed real DFT, reflect slab) ----
    win_ref[:, :TM] = xrm_ref[0]
    win_ref[:, TM:] = xrh_ref[0]
    for d in range(D):
        rhs_ref[d * SCP:(d + 1) * SCP, :] = win_ref[:, d:d + TM]
    spec = jnp.dot(ws_ref[...], rhs_ref[...], preferred_element_type=jnp.float32)

    # only frames < L_valid may contribute to the per-sample dB maximum
    col = lax.broadcasted_iota(jnp.int32, (1, TM), 1) + pl.program_id(1) * TM
    valid = col < L_valid                                      # (1, TM)

    mx = None
    for c in range(C):
        re = spec[c * 2 * H:c * 2 * H + H, :]
        im = spec[c * 2 * H + H:c * 2 * H + 2 * H, :]
        db = 10.0 * jnp.log10(jnp.maximum(re * re + im * im, 1e-10))
        img_ref[0, NG + c] = db
        m_c = jnp.max(jnp.where(valid, db, -1e30))
        mx = m_c if mx is None else jnp.maximum(mx, m_c)
    mx_ref[...] = jnp.full((1, 1, 1, 1), mx, dtype=jnp.float32)


# ----------------------------------------------------------------------------
# Second tiny kernel: clamp only the spectrogram channels in place (top_db=80)
# ----------------------------------------------------------------------------
def _clamp_spec_kernel(floor_ref, img_ref, out_ref):
    b = pl.program_id(0)
    out_ref[...] = jnp.maximum(img_ref[...], floor_ref[b])


# ----------------------------------------------------------------------------
# Layout helpers (pure plumbing, ~1x data; no k/stride im2col blowup in HBM)
# ----------------------------------------------------------------------------
def _pick_tile(L, batch, cap=2048):
    """Pad L to a multiple of 128 and pick the largest tile (<= cap) dividing it."""
    Lp = ((L + 127) // 128) * 128
    tm = 128
    for t in (4096, 2048, 1024, 512, 256, 128):
        if t <= cap and Lp % t == 0:
            tm = t
            break
    # prefer >= 2 grid steps so both v7x TensorCores can pick up work
    while batch * (Lp // tm) < 2 and tm > 128:
        tm //= 2
    return Lp, tm


def _stride_slab(xp, stride, q_len, rows):
    """(B, C, P) padded signal -> (B, rows, q_len) slab with
    slab[b, r*C + c, q] = xp[b, c, q*stride + r]; rows >= stride*C are zero."""
    B, C, P = xp.shape
    need = q_len * stride
    if P < need:
        xp = jnp.pad(xp, ((0, 0), (0, 0), (0, need - P)))
    else:
        xp = xp[:, :, :need]
    x3 = xp.reshape(B, C, q_len, stride)          # [b, c, q, r]
    x3 = jnp.transpose(x3, (0, 3, 1, 2))          # [b, r, c, q]
    slab = x3.reshape(B, stride * C, q_len)
    if rows > stride * C:
        slab = jnp.pad(slab, ((0, 0), (0, rows - stride * C), (0, 0)))
    return slab


# ----------------------------------------------------------------------------
# Full PANNsFeatureExtractor forward
# ----------------------------------------------------------------------------
class PANNsFeatureExtractorPallas:
    def __init__(self, in_channels=3, base_filters=16, kernel_sizes=(32, 16, 4, 2),
                 stride=4, max_time_tile=2048, key=None):
        # base_filters int -> one Conv1d per branch (no BN/ReLU), sigmoid=False,
        # output_size=None (identity paths in the PyTorch module).
        assert isinstance(base_filters, int)
        self.in_channels = in_channels
        self.base_filters = base_filters
        self.kernel_sizes = tuple(kernel_sizes)
        self.stride = stride
        self.height = base_filters
        self.out_chans = len(kernel_sizes) + in_channels
        self.max_time_tile = max_time_tile

        key = jax.random.PRNGKey(0) if key is None else key
        self.weights, self.biases = [], []
        for k in self.kernel_sizes:
            key, wk, bk = jax.random.split(key, 3)
            fan_in = in_channels * k
            # kaiming_normal_ (reinit=True): std = sqrt(2 / fan_in)
            w = jax.random.normal(wk, (base_filters, in_channels, k), jnp.float32)
            w = w * jnp.sqrt(2.0 / fan_in)
            # default Conv1d bias init: U(-1/sqrt(fan_in), 1/sqrt(fan_in))
            b = jax.random.uniform(bk, (base_filters,), jnp.float32,
                                   minval=-1.0 / np.sqrt(fan_in),
                                   maxval=1.0 / np.sqrt(fan_in))
            self.weights.append(w)
            self.biases.append(b)

        # ---- pack the fused, lane-dense operands once -------------------------
        C, H, s = in_channels, self.height, stride
        NG = len(self.kernel_sizes)
        k_max = max(self.kernel_sizes)
        n_fft = 2 * H - 1
        pad_conv = (k_max - 1) // 2
        pad_spec = n_fft // 2
        D = max(-(-k_max // s), -(-n_fft // s))      # halo depth (ceil-div)
        SCP = ((s * C + 7) // 8) * 8                 # sublane-padded rows / shift
        KP = D * SCP                                 # fused contraction dim

        # Conv branches as one (NG*H, KP) matrix:
        #   Wc[g*H + f, d*SCP + r*C + c] multiplies xz[c, (t+d)*s + r]
        wc = np.zeros((NG * H, KP), np.float32)
        for g, (w, k) in enumerate(zip(self.weights, self.kernel_sizes)):
            off = pad_conv - (k - 1) // 2            # align each branch's padding
            w_np = np.asarray(w)                     # (H, C, k)
            for u in range(k):
                d, r = divmod(u + off, s)
                assert 0 <= d < D
                for c in range(C):
                    wc[g * H:(g + 1) * H, d * SCP + r * C + c] = w_np[:, c, u]
        bias = np.concatenate([np.asarray(b) for b in self.biases]).reshape(NG * H, 1)

        # Hann-windowed real DFT (cos; sin) for every input channel, block-diag.
        n = np.arange(n_fft, dtype=np.float64)
        win = 0.5 * (1.0 - np.cos(2.0 * np.pi * n / n_fft))   # periodic Hann
        h = np.arange(H, dtype=np.float64)
        ang = 2.0 * np.pi * np.outer(h, n) / n_fft             # (H, n_fft)
        cs = (np.cos(ang) * win).astype(np.float32)
        sn = (np.sin(ang) * win).astype(np.float32)
        ws = np.zeros((C * 2 * H, KP), np.float32)
        for j in range(n_fft):
            d, r = divmod(j, s)
            assert 0 <= d < D
            for c in range(C):
                ws[c * 2 * H:c * 2 * H + H, d * SCP + r * C + c] = cs[:, j]
                ws[c * 2 * H + H:c * 2 * H + 2 * H, d * SCP + r * C + c] = sn[:, j]

        self._wc = jnp.asarray(wc)
        self._bias = jnp.asarray(bias)
        self._ws = jnp.asarray(ws)
        self._D, self._SCP, self._KP = D, SCP, KP
        self._pad_conv, self._pad_spec, self._n_fft = pad_conv, pad_spec, n_fft

    def __call__(self, x):
        """x: (B, C, T) -> (B, out_chans, height, T // stride)"""
        x = x.astype(jnp.float32)
        B, C, T = x.shape
        assert C == self.in_channels
        s, H, NG = self.stride, self.height, len(self.kernel_sizes)
        D, SCP, KP = self._D, self._SCP, self._KP
        assert T % s == 0, "time_steps must be divisible by stride"
        L = T // s
        assert T > self._pad_spec, "time_steps too short for reflect padding"
        # every conv branch and the STFT must produce exactly L frames
        for k in self.kernel_sizes:
            p = (k - 1) // 2
            assert (T + 2 * p - k) // s + 1 == L
        assert 1 + (T + 2 * self._pad_spec - self._n_fft) // s == L
        # non-zero STFT taps must stay inside the reflect-padded signal
        assert (L - 1) * s + self._n_fft <= T + 2 * self._pad_spec

        Lp, TM = _pick_tile(L, B, self.max_time_tile)
        Mt = Lp // TM
        TMB = TM // 128
        q_len = Mt * TM + 128
        NCHAN = NG + C

        # stride-reshaped slabs (~1x data); kernel reads (main block + 128 halo)
        xz = jnp.pad(x, ((0, 0), (0, 0), (self._pad_conv, self._pad_conv)))
        xr = jnp.pad(x, ((0, 0), (0, 0), (self._pad_spec, self._pad_spec)),
                     mode="reflect")
        slab_z = _stride_slab(xz, s, q_len, SCP)      # (B, SCP, q_len)
        slab_r = _stride_slab(xr, s, q_len, SCP)

        kernel = functools.partial(_panns_fused_kernel, C=C, H=H, NG=NG, D=D,
                                   SCP=SCP, TM=TM, L_valid=L)
        cost = pl.CostEstimate(
            flops=2 * B * Lp * KP * (NG * H + 2 * C * H),
            transcendentals=B * C * H * Lp,
            bytes_accessed=4 * (2 * B * SCP * q_len + B * NCHAN * H * Lp
                                + (2 * NG * H + 2 * C * H) * KP),
        )
        img, mx = pl.pallas_call(
            kernel,
            out_shape=(
                jax.ShapeDtypeStruct((B, NCHAN, H, Lp), jnp.float32),
                jax.ShapeDtypeStruct((B, Mt, 1, 1), jnp.float32),
            ),
            grid=(B, Mt),
            in_specs=[
                pl.BlockSpec((1, SCP, TM), lambda b, m: (b, 0, m)),
                pl.BlockSpec((1, SCP, 128), lambda b, m: (b, 0, (m + 1) * TMB)),
                pl.BlockSpec((1, SCP, TM), lambda b, m: (b, 0, m)),
                pl.BlockSpec((1, SCP, 128), lambda b, m: (b, 0, (m + 1) * TMB)),
                pl.BlockSpec((NG * H, KP), lambda b, m: (0, 0)),
                pl.BlockSpec((NG * H, 1), lambda b, m: (0, 0)),
                pl.BlockSpec((C * 2 * H, KP), lambda b, m: (0, 0)),
            ],
            out_specs=(
                pl.BlockSpec((1, NCHAN, H, TM), lambda b, m: (b, 0, 0, m)),
                pl.BlockSpec((1, 1, 1, 1), lambda b, m: (b, m, 0, 0)),
            ),
            scratch_shapes=[
                pltpu.VMEM((SCP, TM + 128), jnp.float32),   # slab window
                pltpu.VMEM((KP, TM), jnp.float32),          # stacked RHS
            ],
            compiler_params=pltpu.CompilerParams(
                dimension_semantics=("parallel", "parallel")),
            cost_estimate=cost,
        )(slab_z, slab_z, slab_r, slab_r, self._wc, self._bias, self._ws)

        # AmplitudeToDB(top_db=80): per-sample floor, applied IN PLACE to the
        # spectrogram channels only (conv channels are never re-touched).
        floor = jnp.max(mx, axis=(1, 2, 3)) - 80.0            # (B,)
        img = pl.pallas_call(
            _clamp_spec_kernel,
            out_shape=jax.ShapeDtypeStruct(img.shape, img.dtype),
            grid=(B, C, Mt),
            in_specs=[
                pl.BlockSpec(memory_space=pltpu.MemorySpace.SMEM),
                pl.BlockSpec((1, 1, H, TM),
                             lambda b, c, m, NG=NG: (b, NG + c, 0, m)),
            ],
            out_specs=pl.BlockSpec((1, 1, H, TM),
                                   lambda b, c, m, NG=NG: (b, NG + c, 0, m)),
            input_output_aliases={1: 0},
            compiler_params=pltpu.CompilerParams(
                dimension_semantics=("parallel", "parallel", "parallel")),
        )(floor, img)

        if Lp != L:
            img = img[:, :, :, :L]
        return img


# ----------------------------------------------------------------------------
# Pure-JAX reference (mirrors the PyTorch module) for a correctness check
# ----------------------------------------------------------------------------
def _reference_forward(x, weights, biases, kernel_sizes, stride, height):
    hi = jax.lax.Precision.HIGHEST
    B, C, T = x.shape
    H = height
    outs = []
    for w, b, k in zip(weights, biases, kernel_sizes):
        pad = (k - 1) // 2
        xp = jnp.pad(x, ((0, 0), (0, 0), (pad, pad)))
        L = (T + 2 * pad - k) // stride + 1
        idx = jnp.arange(L)[:, None] * stride + jnp.arange(k)[None, :]
        patches = xp[:, :, idx]                                  # (B, C, L, k)
        o = jnp.einsum("bclk,fck->bfl", patches, w, precision=hi)
        outs.append(o + b[None, :, None])
    cnn = jnp.stack(outs, axis=1)                                # (B, NG, H, L)

    n_fft = 2 * H - 1
    pad = n_fft // 2
    xr = jnp.pad(x, ((0, 0), (0, 0), (pad, pad)), mode="reflect")
    NF = 1 + (T + 2 * pad - n_fft) // stride
    idx = jnp.arange(NF)[:, None] * stride + jnp.arange(n_fft)[None, :]
    frames = xr[:, :, idx]                                       # (B, C, NF, n_fft)
    n = jnp.arange(n_fft, dtype=jnp.float32)
    win = 0.5 * (1.0 - jnp.cos(2.0 * jnp.pi * n / n_fft))
    h = jnp.arange(H, dtype=jnp.float32)
    ang = 2.0 * jnp.pi * h[:, None] * n[None, :] / n_fft
    fw = frames * win
    re = jnp.einsum("bctn,hn->bcht", fw, jnp.cos(ang), precision=hi)
    im = jnp.einsum("bctn,hn->bcht", fw, jnp.sin(ang), precision=hi)
    power = re * re + im * im
    db = 10.0 * jnp.log10(jnp.maximum(power, 1e-10))
    gmax = jnp.max(db, axis=(1, 2, 3), keepdims=True)
    db = jnp.maximum(db, gmax - 80.0)
    return jnp.concatenate([cnn, db], axis=1)


if __name__ == "__main__":
    key = jax.random.PRNGKey(0)
    key, pk = jax.random.split(key)

    B, C = 2, 3
    base_filters, stride = 16, 4
    model = PANNsFeatureExtractorPallas(
        in_channels=C, base_filters=base_filters,
        kernel_sizes=(32, 16, 4, 2), stride=stride, key=pk)

    # T=64 exercises the padded/cropped-tail path; T=1536 exercises multi-tile.
    for T in (64, 1536):
        key, xk = jax.random.split(key)
        x = jax.random.normal(xk, (B, C, T), jnp.float32)

        fwd = jax.jit(model.__call__)
        out = jax.block_until_ready(fwd(x))

        expected_shape = (B, len(model.kernel_sizes) + C, base_filters, T // stride)
        assert out.shape == expected_shape, (out.shape, expected_shape)
        assert out.dtype == jnp.float32
        assert bool(jnp.all(jnp.isfinite(out)))

        ref = _reference_forward(x, model.weights, model.biases,
                                 model.kernel_sizes, stride, base_filters)
        err = float(jnp.max(jnp.abs(out - ref)))
        assert bool(jnp.allclose(out, ref, rtol=2e-2, atol=1e-1)), \
            f"T={T} max|diff|={err}"

    print("KERNEL_OK")
</pallas_src>

<mosaic_0001>
module attributes {stable_mosaic.version = 11 : i64} {
  func.func @_clamp_spec_kernel(%arg0: i32, %arg1: i32, %arg2: i32, %arg3: memref<2xf32, #tpu.memory_space<smem>>, %arg4: memref<1x1x16x128xf32, #tpu.memory_space<vmem>>, %arg5: memref<1x1x16x128xf32, #tpu.memory_space<vmem>>) attributes {dimension_semantics = [#tpu.dimension_semantics<parallel>, #tpu.dimension_semantics<parallel>, #tpu.dimension_semantics<parallel>], iteration_bounds = array<i64: 2, 3, 1>, scalar_prefetch = 0 : i64, scratch_operands = 0 : i64, tpu.core_type = #tpu.core_type<tc>, window_params = [{transform_indices = @transform_0, window_bounds = array<i64: 2>}, {transform_indices = @transform_1, window_bounds = array<i64: 1, 1, 16, 128>}, {transform_indices = @transform_2, window_bounds = array<i64: 1, 1, 16, 128>}]} {
    %c0 = arith.constant 0 : index
    %c0_0 = arith.constant 0 : index
    %c0_1 = arith.constant 0 : index
    %c0_2 = arith.constant 0 : index
    %0 = vector.load %arg4[%c0, %c0_0, %c0_1, %c0_2] : memref<1x1x16x128xf32, #tpu.memory_space<vmem>>, vector<1x1x16x128xf32>
    %1 = arith.index_cast %arg0 : i32 to index
    %2 = memref.load %arg3[%1] : memref<2xf32, #tpu.memory_space<smem>>
    %3 = vector.broadcast %2 : f32 to vector<1x1x16x128xf32>
    %4 = arith.maximumf %0, %3 : vector<1x1x16x128xf32>
    %c0_3 = arith.constant 0 : index
    %c0_4 = arith.constant 0 : index
    %c0_5 = arith.constant 0 : index
    %c0_6 = arith.constant 0 : index
    %5 = vector.load %arg5[%c0_3, %c0_4, %c0_5, %c0_6] : memref<1x1x16x128xf32, #tpu.memory_space<vmem>>, vector<1x1x16x128xf32>
    tpu.vector_store %arg5[%c0_3, %c0_4, %c0_5, %c0_6], %4 {strides = array<i32>} : memref<1x1x16x128xf32, #tpu.memory_space<vmem>>, vector<1x1x16x128xf32>,
    return
  }
  func.func @transform_0(%arg0: i32, %arg1: i32, %arg2: i32) -> i32 {
    %c0_i32 = arith.constant 0 : i32
    %c0_i32_0 = arith.constant 0 : i32
    return %c0_i32 : i32
  }
  func.func @transform_1(%arg0: i32, %arg1: i32, %arg2: i32) -> (i32, i32, i32, i32) {
    %c4_i32 = arith.constant 4 : i32
    %0 = arith.addi %c4_i32, %arg1 : i32
    %c0_i32 = arith.constant 0 : i32
    %c0_i32_0 = arith.constant 0 : i32
    return %arg0, %0, %c0_i32, %arg2 : i32, i32, i32, i32
  }
  func.func @transform_2(%arg0: i32, %arg1: i32, %arg2: i32) -> (i32, i32, i32, i32) {
    %c4_i32 = arith.constant 4 : i32
    %0 = arith.addi %c4_i32, %arg1 : i32
    %c0_i32 = arith.constant 0 : i32
    %c0_i32_0 = arith.constant 0 : i32
    return %arg0, %0, %c0_i32, %arg2 : i32, i32, i32, i32
  }
}

module attributes {stable_mosaic.version = 11 : i64} {
  func.func @_panns_fused_kernel(%arg0: i32, %arg1: i32, %arg2: memref<1x16x128xf32, #tpu.memory_space<vmem>>, %arg3: memref<1x16x128xf32, #tpu.memory_space<vmem>>, %arg4: memref<1x16x128xf32, #tpu.memory_space<vmem>>, %arg5: memref<1x16x128xf32, #tpu.memory_space<vmem>>, %arg6: memref<64x128xf32, #tpu.memory_space<vmem>>, %arg7: memref<64x1xf32, #tpu.memory_space<vmem>>, %arg8: memref<96x128xf32, #tpu.memory_space<vmem>>, %arg9: memref<1x7x16x128xf32, #tpu.memory_space<vmem>>, %arg10: memref<1x1x1x1xf32, #tpu.memory_space<vmem>>, %arg11: memref<16x256xf32, #tpu.memory_space<vmem>>, %arg12: memref<128x128xf32, #tpu.memory_space<vmem>>) attributes {dimension_semantics = [#tpu.dimension_semantics<parallel>, #tpu.dimension_semantics<parallel>], iteration_bounds = array<i64: 2, 1>, scalar_prefetch = 0 : i64, scratch_operands = 2 : i64, tpu.core_type = #tpu.core_type<tc>, window_params = [{transform_indices = @transform_0, window_bounds = array<i64: 1, 16, 128>}, {transform_indices = @transform_1, window_bounds = array<i64: 1, 16, 128>}, {transform_indices = @transform_2, window_bounds = array<i64: 1, 16, 128>}, {transform_indices = @transform_3, window_bounds = array<i64: 1, 16, 128>}, {pipeline_mode = #tpu.pipeline_mode<synchronous>, transform_indices = @transform_4, window_bounds = array<i64: 64, 128>}, {pipeline_mode = #tpu.pipeline_mode<synchronous>, transform_indices = @transform_5, window_bounds = array<i64: 64, 1>}, {pipeline_mode = #tpu.pipeline_mode<synchronous>, transform_indices = @transform_6, window_bounds = array<i64: 96, 128>}, {transform_indices = @transform_7, window_bounds = array<i64: 1, 7, 16, 128>}, {transform_indices = @transform_8, window_bounds = array<i64: 1, 1, 1, 1>}]} {
    %c0 = arith.constant 0 : index
    %c0_0 = arith.constant 0 : index
    %c0_1 = arith.constant 0 : index
    %0 = vector.load %arg2[%c0, %c0_0, %c0_1] : memref<1x16x128xf32, #tpu.memory_space<vmem>>, vector<1x16x128xf32>
    %1 = vector.shape_cast %0 : vector<1x16x128xf32> to vector<16x128xf32>
    %c0_2 = arith.constant 0 : index
    %c0_3 = arith.constant 0 : index
    %2 = vector.load %arg11[%c0_2, %c0_3] : memref<16x256xf32, #tpu.memory_space<vmem>>, vector<16x128xf32>
    tpu.vector_store %arg11[%c0_2, %c0_3], %1 {strides = array<i32>} : memref<16x256xf32, #tpu.memory_space<vmem>>, vector<16x128xf32>,
    %c0_4 = arith.constant 0 : index
    %c0_5 = arith.constant 0 : index
    %c0_6 = arith.constant 0 : index
    %3 = vector.load %arg3[%c0_4, %c0_5, %c0_6] : memref<1x16x128xf32, #tpu.memory_space<vmem>>, vector<1x16x128xf32>
    %4 = vector.shape_cast %3 : vector<1x16x128xf32> to vector<16x128xf32>
    %c0_7 = arith.constant 0 : index
    %c128 = arith.constant 128 : index
    %5 = vector.load %arg11[%c0_7, %c128] : memref<16x256xf32, #tpu.memory_space<vmem>>, vector<16x128xf32>
    tpu.vector_store %arg11[%c0_7, %c128], %4 {strides = array<i32>} : memref<16x256xf32, #tpu.memory_space<vmem>>, vector<16x128xf32>,
    %c0_8 = arith.constant 0 : index
    %c0_9 = arith.constant 0 : index
    %6 = vector.load %arg11[%c0_8, %c0_9] : memref<16x256xf32, #tpu.memory_space<vmem>>, vector<16x128xf32>
    %c0_10 = arith.constant 0 : index
    %c0_11 = arith.constant 0 : index
    %7 = vector.load %arg12[%c0_10, %c0_11] : memref<128x128xf32, #tpu.memory_space<vmem>>, vector<16x128xf32>
    tpu.vector_store %arg12[%c0_10, %c0_11], %6 {strides = array<i32>} : memref<128x128xf32, #tpu.memory_space<vmem>>, vector<16x128xf32>,
    %c0_12 = arith.constant 0 : index
    %c1 = arith.constant 1 : index
    %8 = vector.load %arg11[%c0_12, %c1] : memref<16x256xf32, #tpu.memory_space<vmem>>, vector<16x128xf32>
    %c16 = arith.constant 16 : index
    %c0_13 = arith.constant 0 : index
    %9 = vector.load %arg12[%c16, %c0_13] : memref<128x128xf32, #tpu.memory_space<vmem>>, vector<16x128xf32>
    tpu.vector_store %arg12[%c16, %c0_13], %8 {strides = array<i32>} : memref<128x128xf32, #tpu.memory_space<vmem>>, vector<16x128xf32>,
    %c0_14 = arith.constant 0 : index
    %c2 = arith.constant 2 : index
    %10 = vector.load %arg11[%c0_14, %c2] : memref<16x256xf32, #tpu.memory_space<vmem>>, vector<16x128xf32>
    %c32 = arith.constant 32 : index
    %c0_15 = arith.constant 0 : index
    %11 = vector.load %arg12[%c32, %c0_15] : memref<128x128xf32, #tpu.memory_space<vmem>>, vector<16x128xf32>
    tpu.vector_store %arg12[%c32, %c0_15], %10 {strides = array<i32>} : memref<128x128xf32, #tpu.memory_space<vmem>>, vector<16x128xf32>,
    %c0_16 = arith.constant 0 : index
    %c3 = arith.constant 3 : index
    %12 = vector.load %arg11[%c0_16, %c3] : memref<16x256xf32, #tpu.memory_space<vmem>>, vector<16x128xf32>
    %c48 = arith.constant 48 : index
    %c0_17 = arith.constant 0 : index
    %13 = vector.load %arg12[%c48, %c0_17] : memref<128x128xf32, #tpu.memory_space<vmem>>, vector<16x128xf32>
    tpu.vector_store %arg12[%c48, %c0_17], %12 {strides = array<i32>} : memref<128x128xf32, #tpu.memory_space<vmem>>, vector<16x128xf32>,
    %c0_18 = arith.constant 0 : index
    %c4 = arith.constant 4 : index
    %14 = vector.load %arg11[%c0_18, %c4] : memref<16x256xf32, #tpu.memory_space<vmem>>, vector<16x128xf32>
    %c64 = arith.constant 64 : index
    %c0_19 = arith.constant 0 : index
    %15 = vector.load %arg12[%c64, %c0_19] : memref<128x128xf32, #tpu.memory_space<vmem>>, vector<16x128xf32>
    tpu.vector_store %arg12[%c64, %c0_19], %14 {strides = array<i32>} : memref<128x128xf32, #tpu.memory_space<vmem>>, vector<16x128xf32>,
    %c0_20 = arith.constant 0 : index
    %c5 = arith.constant 5 : index
    %16 = vector.load %arg11[%c0_20, %c5] : memref<16x256xf32, #tpu.memory_space<vmem>>, vector<16x128xf32>
    %c80 = arith.constant 80 : index
    %c0_21 = arith.constant 0 : index
    %17 = vector.load %arg12[%c80, %c0_21] : memref<128x128xf32, #tpu.memory_space<vmem>>, vector<16x128xf32>
    tpu.vector_store %arg12[%c80, %c0_21], %16 {strides = array<i32>} : memref<128x128xf32, #tpu.memory_space<vmem>>, vector<16x128xf32>,
    %c0_22 = arith.constant 0 : index
    %c6 = arith.constant 6 : index
    %18 = vector.load %arg11[%c0_22, %c6] : memref<16x256xf32, #tpu.memory_space<vmem>>, vector<16x128xf32>
    %c96 = arith.constant 96 : index
    %c0_23 = arith.constant 0 : index
    %19 = vector.load %arg12[%c96, %c0_23] : memref<128x128xf32, #tpu.memory_space<vmem>>, vector<16x128xf32>
    tpu.vector_store %arg12[%c96, %c0_23], %18 {strides = array<i32>} : memref<128x128xf32, #tpu.memory_space<vmem>>, vector<16x128xf32>,
    %c0_24 = arith.constant 0 : index
    %c7 = arith.constant 7 : index
    %20 = vector.load %arg11[%c0_24, %c7] : memref<16x256xf32, #tpu.memory_space<vmem>>, vector<16x128xf32>
    %c112 = arith.constant 112 : index
    %c0_25 = arith.constant 0 : index
    %21 = vector.load %arg12[%c112, %c0_25] : memref<128x128xf32, #tpu.memory_space<vmem>>, vector<16x128xf32>
    tpu.vector_store %arg12[%c112, %c0_25], %20 {strides = array<i32>} : memref<128x128xf32, #tpu.memory_space<vmem>>, vector<16x128xf32>,
    %c0_26 = arith.constant 0 : index
    %c0_27 = arith.constant 0 : index
    %22 = vector.load %arg6[%c0_26, %c0_27] : memref<64x128xf32, #tpu.memory_space<vmem>>, vector<64x128xf32>
    %c0_28 = arith.constant 0 : index
    %c0_29 = arith.constant 0 : index
    %23 = vector.load %arg12[%c0_28, %c0_29] : memref<128x128xf32, #tpu.memory_space<vmem>>, vector<128x128xf32>
    %cst = arith.constant dense<0.000000e+00> : vector<64x128xf32>
    %24 = tpu.matmul %22, %23, %cst {dimension_numbers = #tpu.dot_dimension_numbers<[1], [0], [0], [1], [0, 0, 1, 1], [], []>} : vector<64x128xf32>, vector<128x128xf32>, vector<64x128xf32> -> vector<64x128xf32>
    %c0_30 = arith.constant 0 : index
    %c0_31 = arith.constant 0 : index
    %25 = vector.load %arg7[%c0_30, %c0_31] : memref<64x1xf32, #tpu.memory_space<vmem>>, vector<64x1xf32>
    %26 = vector.broadcast %25 : vector<64x1xf32> to vector<64x128xf32>
    %27 = arith.addf %24, %26 : vector<64x128xf32>
    %28 = vector.extract_strided_slice %27 {offsets = [0, 0], sizes = [16, 128], strides = [1, 1]} : vector<64x128xf32> to vector<16x128xf32>
    %c0_32 = arith.constant 0 : index
    %c0_33 = arith.constant 0 : index
    %c0_34 = arith.constant 0 : index
    %c0_35 = arith.constant 0 : index
    %29 = vector.load %arg9[%c0_32, %c0_33, %c0_34, %c0_35] : memref<1x7x16x128xf32, #tpu.memory_space<vmem>>, vector<1x1x16x128xf32>
    %30 = vector.shape_cast %29 : vector<1x1x16x128xf32> to vector<16x128xf32>
    %31 = vector.shape_cast %28 : vector<16x128xf32> to vector<1x1x16x128xf32>
    tpu.vector_store %arg9[%c0_32, %c0_33, %c0_34, %c0_35], %31 {strides = array<i32>} : memref<1x7x16x128xf32, #tpu.memory_space<vmem>>, vector<1x1x16x128xf32>,
    %32 = vector.extract_strided_slice %27 {offsets = [16, 0], sizes = [16, 128], strides = [1, 1]} : vector<64x128xf32> to vector<16x128xf32>
    %c0_36 = arith.constant 0 : index
    %c1_37 = arith.constant 1 : index
    %c0_38 = arith.constant 0 : index
    %c0_39 = arith.constant 0 : index
    %33 = vector.load %arg9[%c0_36, %c1_37, %c0_38, %c0_39] : memref<1x7x16x128xf32, #tpu.memory_space<vmem>>, vector<1x1x16x128xf32>
    %34 = vector.shape_cast %33 : vector<1x1x16x128xf32> to vector<16x128xf32>
    %35 = vector.shape_cast %32 : vector<16x128xf32> to vector<1x1x16x128xf32>
    tpu.vector_store %arg9[%c0_36, %c1_37, %c0_38, %c0_39], %35 {strides = array<i32>} : memref<1x7x16x128xf32, #tpu.memory_space<vmem>>, vector<1x1x16x128xf32>,
    %36 = vector.extract_strided_slice %27 {offsets = [32, 0], sizes = [16, 128], strides = [1, 1]} : vector<64x128xf32> to vector<16x128xf32>
    %c0_40 = arith.constant 0 : index
    %c2_41 = arith.constant 2 : index
    %c0_42 = arith.constant 0 : index
    %c0_43 = arith.constant 0 : index
    %37 = vector.load %arg9[%c0_40, %c2_41, %c0_42, %c0_43] : memref<1x7x16x128xf32, #tpu.memory_space<vmem>>, vector<1x1x16x128xf32>
    %38 = vector.shape_cast %37 : vector<1x1x16x128xf32> to vector<16x128xf32>
    %39 = vector.shape_cast %36 : vector<16x128xf32> to vector<1x1x16x128xf32>
    tpu.vector_store %arg9[%c0_40, %c2_41, %c0_42, %c0_43], %39 {strides = array<i32>} : memref<1x7x16x128xf32, #tpu.memory_space<vmem>>, vector<1x1x16x128xf32>,
    %40 = vector.extract_strided_slice %27 {offsets = [48, 0], sizes = [16, 128], strides = [1, 1]} : vector<64x128xf32> to vector<16x128xf32>
    %c0_44 = arith.constant 0 : index
    %c3_45 = arith.constant 3 : index
    %c0_46 = arith.constant 0 : index
    %c0_47 = arith.constant 0 : index
    %41 = vector.load %arg9[%c0_44, %c3_45, %c0_46, %c0_47] : memref<1x7x16x128xf32, #tpu.memory_space<vmem>>, vector<1x1x16x128xf32>
    %42 = vector.shape_cast %41 : vector<1x1x16x128xf32> to vector<16x128xf32>
    %43 = vector.shape_cast %40 : vector<16x128xf32> to vector<1x1x16x128xf32>
    tpu.vector_store %arg9[%c0_44, %c3_45, %c0_46, %c0_47], %43 {strides = array<i32>} : memref<1x7x16x128xf32, #tpu.memory_space<vmem>>, vector<1x1x16x128xf32>,
    %c0_48 = arith.constant 0 : index
    %c0_49 = arith.constant 0 : index
    %c0_50 = arith.constant 0 : index
    %44 = vector.load %arg4[%c0_48, %c0_49, %c0_50] : memref<1x16x128xf32, #tpu.memory_space<vmem>>, vector<1x16x128xf32>
    %45 = vector.shape_cast %44 : vector<1x16x128xf32> to vector<16x128xf32>
    %c0_51 = arith.constant 0 : index
    %c0_52 = arith.constant 0 : index
    %46 = vector.load %arg11[%c0_51, %c0_52] : memref<16x256xf32, #tpu.memory_space<vmem>>, vector<16x128xf32>
    tpu.vector_store %arg11[%c0_51, %c0_52], %45 {strides = array<i32>} : memref<16x256xf32, #tpu.memory_space<vmem>>, vector<16x128xf32>,
    %c0_53 = arith.constant 0 : index
    %c0_54 = arith.constant 0 : index
    %c0_55 = arith.constant 0 : index
    %47 = vector.load %arg5[%c0_53, %c0_54, %c0_55] : memref<1x16x128xf32, #tpu.memory_space<vmem>>, vector<1x16x128xf32>
    %48 = vector.shape_cast %47 : vector<1x16x128xf32> to vector<16x128xf32>
    %c0_56 = arith.constant 0 : index
    %c128_57 = arith.constant 128 : index
    %49 = vector.load %arg11[%c0_56, %c128_57] : memref<16x256xf32, #tpu.memory_space<vmem>>, vector<16x128xf32>
    tpu.vector_store %arg11[%c0_56, %c128_57], %48 {strides = array<i32>} : memref<16x256xf32, #tpu.memory_space<vmem>>, vector<16x128xf32>,
    %c0_58 = arith.constant 0 : index
    %c0_59 = arith.constant 0 : index
    %50 = vector.load %arg11[%c0_58, %c0_59] : memref<16x256xf32, #tpu.memory_space<vmem>>, vector<16x128xf32>
    %c0_60 = arith.constant 0 : index
    %c0_61 = arith.constant 0 : index
    %51 = vector.load %arg12[%c0_60, %c0_61] : memref<128x128xf32, #tpu.memory_space<vmem>>, vector<16x128xf32>
    tpu.vector_store %arg12[%c0_60, %c0_61], %50 {strides = array<i32>} : memref<128x128xf32, #tpu.memory_space<vmem>>, vector<16x128xf32>,
    %c0_62 = arith.constant 0 : index
    %c1_63 = arith.constant 1 : index
    %52 = vector.load %arg11[%c0_62, %c1_63] : memref<16x256xf32, #tpu.memory_space<vmem>>, vector<16x128xf32>
    %c16_64 = arith.constant 16 : index
    %c0_65 = arith.constant 0 : index
    %53 = vector.load %arg12[%c16_64, %c0_65] : memref<128x128xf32, #tpu.memory_space<vmem>>, vector<16x128xf32>
    tpu.vector_store %arg12[%c16_64, %c0_65], %52 {strides = array<i32>} : memref<128x128xf32, #tpu.memory_space<vmem>>, vector<16x128xf32>,
    %c0_66 = arith.constant 0 : index
    %c2_67 = arith.constant 2 : index
    %54 = vector.load %arg11[%c0_66, %c2_67] : memref<16x256xf32, #tpu.memory_space<vmem>>, vector<16x128xf32>
    %c32_68 = arith.constant 32 : index
    %c0_69 = arith.constant 0 : index
    %55 = vector.load %arg12[%c32_68, %c0_69] : memref<128x128xf32, #tpu.memory_space<vmem>>, vector<16x128xf32>
    tpu.vector_store %arg12[%c32_68, %c0_69], %54 {strides = array<i32>} : memref<128x128xf32, #tpu.memory_space<vmem>>, vector<16x128xf32>,
    %c0_70 = arith.constant 0 : index
    %c3_71 = arith.constant 3 : index
    %56 = vector.load %arg11[%c0_70, %c3_71] : memref<16x256xf32, #tpu.memory_space<vmem>>, vector<16x128xf32>
    %c48_72 = arith.constant 48 : index
    %c0_73 = arith.constant 0 : index
    %57 = vector.load %arg12[%c48_72, %c0_73] : memref<128x128xf32, #tpu.memory_space<vmem>>, vector<16x128xf32>
    tpu.vector_store %arg12[%c48_72, %c0_73], %56 {strides = array<i32>} : memref<128x128xf32, #tpu.memory_space<vmem>>, vector<16x128xf32>,
    %c0_74 = arith.constant 0 : index
    %c4_75 = arith.constant 4 : index
    %58 = vector.load %arg11[%c0_74, %c4_75] : memref<16x256xf32, #tpu.memory_space<vmem>>, vector<16x128xf32>
    %c64_76 = arith.constant 64 : index
    %c0_77 = arith.constant 0 : index
    %59 = vector.load %arg12[%c64_76, %c0_77] : memref<128x128xf32, #tpu.memory_space<vmem>>, vector<16x128xf32>
    tpu.vector_store %arg12[%c64_76, %c0_77], %58 {strides = array<i32>} : memref<128x128xf32, #tpu.memory_space<vmem>>, vector<16x128xf32>,
    %c0_78 = arith.constant 0 : index
    %c5_79 = arith.constant 5 : index
    %60 = vector.load %arg11[%c0_78, %c5_79] : memref<16x256xf32, #tpu.memory_space<vmem>>, vector<16x128xf32>
    %c80_80 = arith.constant 80 : index
    %c0_81 = arith.constant 0 : index
    %61 = vector.load %arg12[%c80_80, %c0_81] : memref<128x128xf32, #tpu.memory_space<vmem>>, vector<16x128xf32>
    tpu.vector_store %arg12[%c80_80, %c0_81], %60 {strides = array<i32>} : memref<128x128xf32, #tpu.memory_space<vmem>>, vector<16x128xf32>,
    %c0_82 = arith.constant 0 : index
    %c6_83 = arith.constant 6 : index
    %62 = vector.load %arg11[%c0_82, %c6_83] : memref<16x256xf32, #tpu.memory_space<vmem>>, vector<16x128xf32>
    %c96_84 = arith.constant 96 : index
    %c0_85 = arith.constant 0 : index
    %63 = vector.load %arg12[%c96_84, %c0_85] : memref<128x128xf32, #tpu.memory_space<vmem>>, vector<16x128xf32>
    tpu.vector_store %arg12[%c96_84, %c0_85], %62 {strides = array<i32>} : memref<128x128xf32, #tpu.memory_space<vmem>>, vector<16x128xf32>,
    %c0_86 = arith.constant 0 : index
    %c7_87 = arith.constant 7 : index
    %64 = vector.load %arg11[%c0_86, %c7_87] : memref<16x256xf32, #tpu.memory_space<vmem>>, vector<16x128xf32>
    %c112_88 = arith.constant 112 : index
    %c0_89 = arith.constant 0 : index
    %65 = vector.load %arg12[%c112_88, %c0_89] : memref<128x128xf32, #tpu.memory_space<vmem>>, vector<16x128xf32>
    tpu.vector_store %arg12[%c112_88, %c0_89], %64 {strides = array<i32>} : memref<128x128xf32, #tpu.memory_space<vmem>>, vector<16x128xf32>,
    %c0_90 = arith.constant 0 : index
    %c0_91 = arith.constant 0 : index
    %66 = vector.load %arg8[%c0_90, %c0_91] : memref<96x128xf32, #tpu.memory_space<vmem>>, vector<96x128xf32>
    %c0_92 = arith.constant 0 : index
    %c0_93 = arith.constant 0 : index
    %67 = vector.load %arg12[%c0_92, %c0_93] : memref<128x128xf32, #tpu.memory_space<vmem>>, vector<128x128xf32>
    %cst_94 = arith.constant dense<0.000000e+00> : vector<96x128xf32>
    %68 = tpu.matmul %66, %67, %cst_94 {dimension_numbers = #tpu.dot_dimension_numbers<[1], [0], [0], [1], [0, 0, 1, 1], [], []>} : vector<96x128xf32>, vector<128x128xf32>, vector<96x128xf32> -> vector<96x128xf32>
    %69 = tpu.iota {dimensions = array<i32: 1>} : vector<1x128xi32>
    %c128_i32 = arith.constant 128 : i32
    %70 = arith.muli %arg1, %c128_i32 : i32
    %71 = vector.broadcast %70 : i32 to vector<1x128xi32>
    %72 = arith.addi %69, %71 : vector<1x128xi32>
    %c16_i32 = arith.constant 16 : i32
    %73 = vector.broadcast %c16_i32 : i32 to vector<1x128xi32>
    %74 = arith.cmpi slt, %72, %73 : vector<1x128xi32>
    %75 = vector.extract_strided_slice %68 {offsets = [0, 0], sizes = [16, 128], strides = [1, 1]} : vector<96x128xf32> to vector<16x128xf32>
    %76 = vector.extract_strided_slice %68 {offsets = [16, 0], sizes = [16, 128], strides = [1, 1]} : vector<96x128xf32> to vector<16x128xf32>
    %77 = arith.mulf %75, %75 : vector<16x128xf32>
    %78 = arith.mulf %76, %76 : vector<16x128xf32>
    %79 = arith.addf %77, %78 : vector<16x128xf32>
    %cst_95 = arith.constant 1.000000e-10 : f32
    %80 = vector.broadcast %cst_95 : f32 to vector<16x128xf32>
    %81 = arith.maximumf %79, %80 : vector<16x128xf32>
    %82 = math.log %81 : vector<16x128xf32>
    %cst_96 = arith.constant 0.434294492 : f32
    %83 = vector.broadcast %cst_96 : f32 to vector<16x128xf32>
    %84 = arith.mulf %82, %83 : vector<16x128xf32>
    %cst_97 = arith.constant 1.000000e+01 : f32
    %85 = vector.broadcast %cst_97 : f32 to vector<16x128xf32>
    %86 = arith.mulf %85, %84 : vector<16x128xf32>
    %c0_98 = arith.constant 0 : index
    %c4_99 = arith.constant 4 : index
    %c0_100 = arith.constant 0 : index
    %c0_101 = arith.constant 0 : index
    %87 = vector.load %arg9[%c0_98, %c4_99, %c0_100, %c0_101] : memref<1x7x16x128xf32, #tpu.memory_space<vmem>>, vector<1x1x16x128xf32>
    %88 = vector.shape_cast %87 : vector<1x1x16x128xf32> to vector<16x128xf32>
    %89 = vector.shape_cast %86 : vector<16x128xf32> to vector<1x1x16x128xf32>
    tpu.vector_store %arg9[%c0_98, %c4_99, %c0_100, %c0_101], %89 {strides = array<i32>} : memref<1x7x16x128xf32, #tpu.memory_space<vmem>>, vector<1x1x16x128xf32>,
    %cst_102 = arith.constant -1.000000e+30 : f32
    %90 = vector.shape_cast %74 : vector<1x128xi1> to vector<1x128xi1>
    %91 = vector.broadcast %90 : vector<1x128xi1> to vector<16x128xi1>
    %92 = vector.broadcast %cst_102 : f32 to vector<16x128xf32>
    %93 = arith.select %91, %86, %92 : vector<16x128xi1>, vector<16x128xf32>
    %94 = vector.shape_cast %93 : vector<16x128xf32> to vector<1x16x128xf32>
    %cst_103 = arith.constant dense<0xFF800000> : vector<1xf32>
    %95 = vector.multi_reduction <maximumf>, %94, %cst_103 [1, 2] : vector<1x16x128xf32> to vector<1xf32>
    %96 = vector.shape_cast %95 : vector<1xf32> to vector<1x1x1xf32>
    %97 = vector.extract %96[0, 0, 0] : f32 from vector<1x1x1xf32>
    %98 = vector.extract_strided_slice %68 {offsets = [32, 0], sizes = [16, 128], strides = [1, 1]} : vector<96x128xf32> to vector<16x128xf32>
    %99 = vector.extract_strided_slice %68 {offsets = [48, 0], sizes = [16, 128], strides = [1, 1]} : vector<96x128xf32> to vector<16x128xf32>
    %100 = arith.mulf %98, %98 : vector<16x128xf32>
    %101 = arith.mulf %99, %99 : vector<16x128xf32>
    %102 = arith.addf %100, %101 : vector<16x128xf32>
    %cst_104 = arith.constant 1.000000e-10 : f32
    %103 = vector.broadcast %cst_104 : f32 to vector<16x128xf32>
    %104 = arith.maximumf %102, %103 : vector<16x128xf32>
    %105 = math.log %104 : vector<16x128xf32>
    %cst_105 = arith.constant 0.434294492 : f32
    %106 = vector.broadcast %cst_105 : f32 to vector<16x128xf32>
    %107 = arith.mulf %105, %106 : vector<16x128xf32>
    %cst_106 = arith.constant 1.000000e+01 : f32
    %108 = vector.broadcast %cst_106 : f32 to vector<16x128xf32>
    %109 = arith.mulf %108, %107 : vector<16x128xf32>
    %c0_107 = arith.constant 0 : index
    %c5_108 = arith.constant 5 : index
    %c0_109 = arith.constant 0 : index
    %c0_110 = arith.constant 0 : index
    %110 = vector.load %arg9[%c0_107, %c5_108, %c0_109, %c0_110] : memref<1x7x16x128xf32, #tpu.memory_space<vmem>>, vector<1x1x16x128xf32>
    %111 = vector.shape_cast %110 : vector<1x1x16x128xf32> to vector<16x128xf32>
    %112 = vector.shape_cast %109 : vector<16x128xf32> to vector<1x1x16x128xf32>
    tpu.vector_store %arg9[%c0_107, %c5_108, %c0_109, %c0_110], %112 {strides = array<i32>} : memref<1x7x16x128xf32, #tpu.memory_space<vmem>>, vector<1x1x16x128xf32>,
    %cst_111 = arith.constant -1.000000e+30 : f32
    %113 = vector.shape_cast %74 : vector<1x128xi1> to vector<1x128xi1>
    %114 = vector.broadcast %113 : vector<1x128xi1> to vector<16x128xi1>
    %115 = vector.broadcast %cst_111 : f32 to vector<16x128xf32>
    %116 = arith.select %114, %109, %115 : vector<16x128xi1>, vector<16x128xf32>
    %117 = vector.shape_cast %116 : vector<16x128xf32> to vector<1x16x128xf32>
    %cst_112 = arith.constant dense<0xFF800000> : vector<1xf32>
    %118 = vector.multi_reduction <maximumf>, %117, %cst_112 [1, 2] : vector<1x16x128xf32> to vector<1xf32>
    %119 = vector.shape_cast %118 : vector<1xf32> to vector<1x1x1xf32>
    %120 = vector.extract %119[0, 0, 0] : f32 from vector<1x1x1xf32>
    %121 = arith.maximumf %97, %120 : f32
    %122 = vector.extract_strided_slice %68 {offsets = [64, 0], sizes = [16, 128], strides = [1, 1]} : vector<96x128xf32> to vector<16x128xf32>
    %123 = vector.extract_strided_slice %68 {offsets = [80, 0], sizes = [16, 128], strides = [1, 1]} : vector<96x128xf32> to vector<16x128xf32>
    %124 = arith.mulf %122, %122 : vector<16x128xf32>
    %125 = arith.mulf %123, %123 : vector<16x128xf32>
    %126 = arith.addf %124, %125 : vector<16x128xf32>
    %cst_113 = arith.constant 1.000000e-10 : f32
    %127 = vector.broadcast %cst_113 : f32 to vector<16x128xf32>
    %128 = arith.maximumf %126, %127 : vector<16x128xf32>
    %129 = math.log %128 : vector<16x128xf32>
    %cst_114 = arith.constant 0.434294492 : f32
    %130 = vector.broadcast %cst_114 : f32 to vector<16x128xf32>
    %131 = arith.mulf %129, %130 : vector<16x128xf32>
    %cst_115 = arith.constant 1.000000e+01 : f32
    %132 = vector.broadcast %cst_115 : f32 to vector<16x128xf32>
    %133 = arith.mulf %132, %131 : vector<16x128xf32>
    %c0_116 = arith.constant 0 : index
    %c6_117 = arith.constant 6 : index
    %c0_118 = arith.constant 0 : index
    %c0_119 = arith.constant 0 : index
    %134 = vector.load %arg9[%c0_116, %c6_117, %c0_118, %c0_119] : memref<1x7x16x128xf32, #tpu.memory_space<vmem>>, vector<1x1x16x128xf32>
    %135 = vector.shape_cast %134 : vector<1x1x16x128xf32> to vector<16x128xf32>
    %136 = vector.shape_cast %133 : vector<16x128xf32> to vector<1x1x16x128xf32>
    tpu.vector_store %arg9[%c0_116, %c6_117, %c0_118, %c0_119], %136 {strides = array<i32>} : memref<1x7x16x128xf32, #tpu.memory_space<vmem>>, vector<1x1x16x128xf32>,
    %cst_120 = arith.constant -1.000000e+30 : f32
    %137 = vector.shape_cast %74 : vector<1x128xi1> to vector<1x128xi1>
    %138 = vector.broadcast %137 : vector<1x128xi1> to vector<16x128xi1>
    %139 = vector.broadcast %cst_120 : f32 to vector<16x128xf32>
    %140 = arith.select %138, %133, %139 : vector<16x128xi1>, vector<16x128xf32>
    %141 = vector.shape_cast %140 : vector<16x128xf32> to vector<1x16x128xf32>
    %cst_121 = arith.constant dense<0xFF800000> : vector<1xf32>
    %142 = vector.multi_reduction <maximumf>, %141, %cst_121 [1, 2] : vector<1x16x128xf32> to vector<1xf32>
    %143 = vector.shape_cast %142 : vector<1xf32> to vector<1x1x1xf32>
    %144 = vector.extract %143[0, 0, 0] : f32 from vector<1x1x1xf32>
    %145 = arith.maximumf %121, %144 : f32
    %146 = vector.broadcast %145 : f32 to vector<1x1x1x1xf32>
    %c0_122 = arith.constant 0 : index
    %c0_123 = arith.constant 0 : index
    %c0_124 = arith.constant 0 : index
    %c0_125 = arith.constant 0 : index
    %147 = vector.load %arg10[%c0_122, %c0_123, %c0_124, %c0_125] : memref<1x1x1x1xf32, #tpu.memory_space<vmem>>, vector<1x1x1x1xf32>
    tpu.vector_store %arg10[%c0_122, %c0_123, %c0_124, %c0_125], %146 {strides = array<i32>} : memref<1x1x1x1xf32, #tpu.memory_space<vmem>>, vector<1x1x1x1xf32>,
    return
  }
  func.func @transform_0(%arg0: i32, %arg1: i32) -> (i32, i32, i32) {
    %c0_i32 = arith.constant 0 : i32
    %c0_i32_0 = arith.constant 0 : i32
    return %arg0, %c0_i32, %arg1 : i32, i32, i32
  }
  func.func @transform_1(%arg0: i32, %arg1: i32) -> (i32, i32, i32) {
    %c1_i32 = arith.constant 1 : i32
    %0 = arith.addi %arg1, %c1_i32 : i32
    %c1_i32_0 = arith.constant 1 : i32
    %1 = arith.muli %0, %c1_i32_0 : i32
    %c0_i32 = arith.constant 0 : i32
    %c0_i32_1 = arith.constant 0 : i32
    return %arg0, %c0_i32, %1 : i32, i32, i32
  }
  func.func @transform_2(%arg0: i32, %arg1: i32) -> (i32, i32, i32) {
    %c0_i32 = arith.constant 0 : i32
    %c0_i32_0 = arith.constant 0 : i32
    return %arg0, %c0_i32, %arg1 : i32, i32, i32
  }
  func.func @transform_3(%arg0: i32, %arg1: i32) -> (i32, i32, i32) {
    %c1_i32 = arith.constant 1 : i32
    %0 = arith.addi %arg1, %c1_i32 : i32
    %c1_i32_0 = arith.constant 1 : i32
    %1 = arith.muli %0, %c1_i32_0 : i32
    %c0_i32 = arith.constant 0 : i32
    %c0_i32_1 = arith.constant 0 : i32
    return %arg0, %c0_i32, %1 : i32, i32, i32
  }
  func.func @transform_4(%arg0: i32, %arg1: i32) -> (i32, i32) {
    %c0_i32 = arith.constant 0 : i32
    %c0_i32_0 = arith.constant 0 : i32
    %c0_i32_1 = arith.constant 0 : i32
    return %c0_i32, %c0_i32_0 : i32, i32
  }
  func.func @transform_5(%arg0: i32, %arg1: i32) -> (i32, i32) {
    %c0_i32 = arith.constant 0 : i32
    %c0_i32_0 = arith.constant 0 : i32
    %c0_i32_1 = arith.constant 0 : i32
    return %c0_i32, %c0_i32_0 : i32, i32
  }
  func.func @transform_6(%arg0: i32, %arg1: i32) -> (i32, i32) {
    %c0_i32 = arith.constant 0 : i32
    %c0_i32_0 = arith.constant 0 : i32
    %c0_i32_1 = arith.constant 0 : i32
    return %c0_i32, %c0_i32_0 : i32, i32
  }
  func.func @transform_7(%arg0: i32, %arg1: i32) -> (i32, i32, i32, i32) {
    %c0_i32 = arith.constant 0 : i32
    %c0_i32_0 = arith.constant 0 : i32
    %c0_i32_1 = arith.constant 0 : i32
    return %arg0, %c0_i32, %c0_i32_0, %arg1 : i32, i32, i32, i32
  }
  func.func @transform_8(%arg0: i32, %arg1: i32) -> (i32, i32, i32, i32) {
    %c0_i32 = arith.constant 0 : i32
    %c0_i32_0 = arith.constant 0 : i32
    %c0_i32_1 = arith.constant 0 : i32
    return %arg0, %arg1, %c0_i32, %c0_i32_0 : i32, i32, i32, i32
  }
}

</mosaic_0001>

<bundles_post_ra>
// kernel: a_call__.3
= control target key start
LH: loop header
LB: loop body
LE: loop exit
PB: predicated region body
PF: predicated region fallthrough
CT: control target
= control target key end

     0   :  { %7 = vsyncpa [#allocation3], 0  ;;  %s507_s9 = smov 0   ;;  %s509_s10 = smov 0   ;;  %s588_s0 = inlined_call_operand.vmem [shape: f32[2], index: 0, kind: input, shape index: {}]   ;;  %s589_s1 = inlined_call_operand.vmem [shape: f32[2,7,16,128], index: 1, kind: input, shape index: {}, may-alias: {1,2}]   ;;  %s590_s2 = inlined_call_operand.vmem [shape: f32[2,7,16,128], index: 2, kind: output, shape index: {}, may-alias: {1,2}]  }
   0x1   :  { %s511_s11 = smov 0   ;;  %s513_s12 = smov 0  }
   0x2   :  { %s515_s13 = smov 0  }
   0x3 LB: > { %s367_s14 = sadd.s32 4294967295, %s489_s13   ;;  %s28_s15 = sadd.s32 1, %s481_s11  ;;  %s489_s13 = sphi %s515_s13, %s13_s13   ;;  %s485_s12 = sphi %s513_s12, %s596_s12   ;;  %s481_s11 = sphi %s511_s11, %s595_s11   ;;  %s477_s10 = sphi %s509_s10, %s594_s10   ;;  %s473_s9 = sphi %s507_s9, %s593_s9  }
   0x4   : > { %p30_p0 = scmp.ge.s32.totalorder %s28_s15, 3  ;;  %s32_s16 = sadd.s32 1, %s485_s12 }
   0x5   : > { %p369_p1 = scmp.ge.s32.totalorder %s489_s13, 1  ;;  %p122_p2 = scmp.lt.s32.totalorder %s489_s13, 7 }
   0x6   : > { %s598_s15 = smov (%p30_p0, %s28_s15), 0  ;;  %s600_s16 = smov (!%p30_p0, %s32_s16), %s485_s12 }
   0x7   : > { %p540_p3 = pnand %p369_p1, %p122_p2  ;;  %p34_p4 = scmp.ge.s32.totalorder %s600_s16, 2 }
   0x8   : > { %p544_p5 = scmp.eq.s32.totalorder %s367_s14, 0  ;;  %s135_s21 = sshll.u32 %s588_s0, 4  ;;  %s136_s21 = int_to_ptr.vmem [resolvable:$true] %s135_s21 }
   0x9   : > { %p385_p6 = pneg %p540_p3  ;;  %s602_s16 = smov (%p34_p4, %s600_s16), 0 }
   0xa   : > { %s432_s22 = scalar_lea.vmem %s136_s21, 16  ;;  %p440_p12 = scmp.lt.s32.totalorder %s136_s21, %s136_s21 }
   0xb   : > { %p386_p7 = pnand %p544_p5, %p385_p6  ;;  %p433_p8 = scmp.ne.s32.totalorder %s136_s21, %s432_s22 }
   0xc   : > { %p441_p13 = scmp.lt.s32.totalorder %s432_s22, %s432_s22 }
   0xd   : > { %p434_p9 = pneg %p386_p7 }
   0xe   : > { %p442_p0 = por %p441_p13, %p440_p12 }
   0xf   : > { %p435_p10 = pnand %p434_p9, %p433_p8 }
  0x11   : > { %p436_p11 = pneg %p435_p10 }
  0x13   : > { %p443_p1 = pnand %p442_p0, %p436_p11 }
  0x15   : > { %446 = shalt.err (!%p443_p1)
}
  0x16   : > { %s491_s23 = smov [#allocation2]   ;;  %165 = sbr.rel (%p540_p3) target bundleno = 44 (0x2c), region = 28 }
  0x17   : > { %388 = dma.vmem_to_smem (!%p386_p7), %s136_s21, 16, %s491_s23, [#allocation3]  }
  0x1d   : > { %468 = dma.done.wait (%p544_p5), [#allocation3], 16  }
  0x1e   : > { %470 = vsyncadd (%p544_p5), [#allocation3], 4294967280 }
  0x1f   : > { %171 = sfence }
  0x20   : > { %s204_s24 = sadd.s32 4, %s473_s9  ;;  %p205_p2 = scmp.lt.s32.totalorder %s477_s10, 1 }
  0x21   : > { %p207_p4 = scmp.lt.s32.totalorder %s204_s24, 6  ;;  %s234_s25 = sld [smem:[#allocation2 + %s477_s10]] }
  0x22   : > { %s604_s10 = smov (!%p205_p2, %s477_s10), 1 }
  0x23   : > { %s606_s24 = smov (!%p207_p4, %s204_s24), 6  ;;  %s380_s26 = smul.u32 14, %s604_s10 }
  0x24   : > { %s374_s27 = sshll.u32 %s606_s24, 1 }
  0x25   : > { %s214_s28 = sadd.s32 %s380_s26, %s374_s27 }
  0x26   : > { %s375_s29 = sshll.u32 %s214_s28, 3 }
  0x27   : > { %v235_v0 = vstv %s234_s25  ;;  %s216_s4 = scalar_lea.vmem %s589_s1, %s375_s29  ;;  %s230_s7 = scalar_lea.vmem %s590_s2, %s375_s29 }
  0x28   : > { %v232_v1 = vld [vmem:[%s216_s4] sm:$0xff]  ;;  %v233_v2 = vld [vmem:[%s216_s4 + $0x8] sm:$0xff] }
  0x29   : > { %v236_v3 = vmax.f32 %v232_v1, %v235_v0  ;;  %v237_v4 = vmax.f32 %v233_v2, %v235_v0 }
  0x2b   : > { %238 = vst [vmem:[%s230_s7] sm:$0xff] %v236_v3  ;;  %239 = vst [vmem:[%s230_s7 + $0x8] sm:$0xff] %v237_v4 }
  0x2c PF: > { %s13_s13 = sadd.s32 1, %s489_s13   ;;  %s593_s9 = smov %s481_s11 }
  0x2d   : > { %p10_p3 = scmp.ge.s32.totalorder %s13_s13, 8   ;;  %s594_s10 = smov %s485_s12 }
  0x2e   : > { %s595_s11 = smov %s598_s15  ;;  %s596_s12 = smov %s602_s16 }
  0x2f   :  { %12 = sbr.rel (!%p10_p3) target bundleno = 3 (0x3), region = 63 }
  0x36   :  { %278 = vsyncpa [#allocation3], 1 }
  0x37   :  { %280 = vsyncpa [#allocation3 + $0x1], 1 }

// kernel: a_call__.2
= control target key start
LH: loop header
LB: loop body
LE: loop exit
PB: predicated region body
PF: predicated region fallthrough
CT: control target
= control target key end

     0   :  { %s2103_s27 = smov 0   ;;  %s2105_s28 = smov 0   ;;  %s2363_s0 = inlined_call_operand.vmem [shape: f32[2,16,256], index: 0, kind: input, shape index: {}, may-alias: {0,1}]   ;;  %s2364_s1 = inlined_call_operand.vmem [shape: f32[2,16,256], index: 1, kind: input, shape index: {}, may-alias: {0,1}]   ;;  %s2365_s2 = inlined_call_operand.vmem [shape: f32[2,16,256], index: 2, kind: input, shape index: {}, may-alias: {2,3}]   ;;  %s2366_s3 = inlined_call_operand.vmem [shape: f32[2,16,256], index: 3, kind: input, shape index: {}, may-alias: {2,3}]   ;;  %s2367_s4 = inlined_call_operand.vmem [shape: f32[64,128], index: 4, kind: input, shape index: {}]   ;;  %s2368_s5 = inlined_call_operand.vmem [shape: f32[64,1], index: 5, kind: input, shape index: {}]   ;;  %s2369_s6 = inlined_call_operand.vmem [shape: f32[96,128], index: 6, kind: input, shape index: {}]   ;;  %s2370_s7 = inlined_call_operand.vmem [shape: f32[2,7,16,128], index: 7, kind: output, shape index: {0}]   ;;  %s2371_s8 = inlined_call_operand.vmem [shape: f32[2,1,1,1], index: 8, kind: output, shape index: {1}]  }
   0x1   :  { %s2107_s29 = smov 0   ;;  %s2109_s30 = smov 0  }
   0x2   :  { %s2111_s9 = smov 0  }
   0x3 LB: > { %s31_s10 = sadd.s32 1, %s2044_s30  ;;  %p47_p1 = scmp.ne.s32.totalorder %s2036_s28, %s2032_s27  ;;  %s2048_s9 = sphi %s2111_s9, %s19_s9   ;;  %s2044_s30 = sphi %s2109_s30, %s2376_s30   ;;  %s2040_s29 = sphi %s2107_s29, %s2375_s29   ;;  %s2036_s28 = sphi %s2105_s28, %s2374_s28   ;;  %s2032_s27 = sphi %s2103_s27, %s2373_s27  }
   0x4   : > { %p33_p0 = scmp.ge.s32.totalorder %s31_s10, 2  ;;  %p48_p2 = scmp.eq.s32.totalorder %s2048_s9, 0 }
   0x5   : > { %s40_s13 = sadd.s32 1, %s2036_s28  ;;  %p1550_p5 = scmp.ge.s32.totalorder %s2048_s9, 2 }
   0x6   : > { %s2378_s10 = smov (%p33_p0, %s31_s10), 0  ;;  %p2134_p3 = por %p48_p2, %p47_p1 }
   0x7   : > { %s35_s12 = ssub.s32 %s2044_s30, %s2378_s10  ;;  %289 = sbr.rel (%p1550_p5) target bundleno = 42 (0x2a), region = 28 }
   0x8   : > { %p38_p4 = scmp.eq.s32.totalorder %s35_s12, 0 }
   0xa   : > { %s2142_s14 = scalar_select %p38_p4, %s2036_s28, %s40_s13  }
   0xe   : > { %292 = sbr.rel (!%p2134_p3) target bundleno = 21 (0x15), region = 32  ;;  %s294_s15 = sand.u32 (%p2134_p3), 1, %s2036_s28  }
   0xf   : > { %s1587_s16 = sshll.u32 (%p2134_p3), %s2044_s30, 5  ;;  %s1551_s17 = sshll.u32 (%p2134_p3), %s294_s15, 4 }
  0x10   : > { %s300_s20 = scalar_lea.vmem (%p2134_p3), %s2363_s0, %s1587_s16  ;;  %s296_s21 = scalar_lea.vmem (%p2134_p3), [#allocation4], %s1551_s17 }
  0x11   : > { %v330_v0 = vld [vmem:[%s300_s20] sm:$0xff] (%p2134_p3)  ;;  %v332_v1 = vld [vmem:[%s300_s20 + $0x10] sm:$0xff] (%p2134_p3) }
  0x12   : > { %331 = vst [vmem:[%s296_s21] sm:$0xff] (%p2134_p3), %v330_v0  ;;  %333 = vst [vmem:[%s296_s21 + $0x8] sm:$0xff] (%p2134_p3), %v332_v1 }
  0x15 PF: > { %339 = sbr.rel (!%p2134_p3) target bundleno = 28 (0x1c), region = 70  ;;  %s341_s22 = sand.u32 (%p2134_p3), 1, %s2036_s28  }
  0x16   : > { %s1588_s23 = sshll.u32 (%p2134_p3), %s2044_s30, 5  ;;  %s1554_s24 = sshll.u32 (%p2134_p3), %s341_s22, 4 }
  0x17   : > { %s1421_s12 = scalar_lea.vmem (%p2134_p3), %s2364_s1, %s1588_s23  ;;  %s343_s13 = scalar_lea.vmem (%p2134_p3), [#allocation5], %s1554_s24 }
  0x18   : > { %v1557_v2 = vld [vmem:[%s1421_s12 + $0x8] sm:$0xff] (%p2134_p3)  ;;  %v1558_v3 = vld [vmem:[%s1421_s12 + $0x18] sm:$0xff] (%p2134_p3) }
  0x19   : > { %379 = vst [vmem:[%s343_s13] sm:$0xff] (%p2134_p3), %v1557_v2  ;;  %381 = vst [vmem:[%s343_s13 + $0x8] sm:$0xff] (%p2134_p3), %v1558_v3 }
  0x1c PF: > { %387 = sbr.rel (!%p2134_p3) target bundleno = 35 (0x23), region = 108  ;;  %s389_s15 = sand.u32 (%p2134_p3), 1, %s2036_s28  }
  0x1d   : > { %s1589_s16 = sshll.u32 (%p2134_p3), %s2044_s30, 5  ;;  %s1559_s17 = sshll.u32 (%p2134_p3), %s389_s15, 4 }
  0x1e   : > { %s395_s20 = scalar_lea.vmem (%p2134_p3), %s2365_s2, %s1589_s16  ;;  %s391_s21 = scalar_lea.vmem (%p2134_p3), [#allocation6], %s1559_s17 }
  0x1f   : > { %v425_v4 = vld [vmem:[%s395_s20] sm:$0xff] (%p2134_p3)  ;;  %v427_v5 = vld [vmem:[%s395_s20 + $0x10] sm:$0xff] (%p2134_p3) }
  0x20   : > { %426 = vst [vmem:[%s391_s21] sm:$0xff] (%p2134_p3), %v425_v4  ;;  %428 = vst [vmem:[%s391_s21 + $0x8] sm:$0xff] (%p2134_p3), %v427_v5 }
  0x23 PF: > { %434 = sbr.rel (!%p2134_p3) target bundleno = 42 (0x2a), region = 146  ;;  %s436_s22 = sand.u32 (%p2134_p3), 1, %s2036_s28  }
  0x24   : > { %s1590_s23 = sshll.u32 (%p2134_p3), %s2044_s30, 5  ;;  %s1562_s24 = sshll.u32 (%p2134_p3), %s436_s22, 4 }
  0x25   : > { %s1434_s12 = scalar_lea.vmem (%p2134_p3), %s2366_s3, %s1590_s23  ;;  %s438_s13 = scalar_lea.vmem (%p2134_p3), [#allocation7], %s1562_s24 }
  0x26   : > { %v1565_v6 = vld [vmem:[%s1434_s12 + $0x8] sm:$0xff] (%p2134_p3)  ;;  %v1566_v7 = vld [vmem:[%s1434_s12 + $0x18] sm:$0xff] (%p2134_p3) }
  0x27   : > { %474 = vst [vmem:[%s438_s13] sm:$0xff] (%p2134_p3), %v1565_v6  ;;  %476 = vst [vmem:[%s438_s13 + $0x8] sm:$0xff] (%p2134_p3), %v1566_v7 }
  0x2a PF: > { %p1567_p6 = scmp.ge.s32.totalorder %s2048_s9, 1  ;;  %p481_p7 = scmp.lt.s32.totalorder %s2048_s9, 3 }
  0x2c   : > { %p482_p8 = pnand %p1567_p6, %p481_p7 }
  0x2d   : > { %s488_s11 = sand.u32 (!%p482_p8), 1, %s2032_s27   ;;  %s2050_s18 = smov (!%p482_p8), 126   ;;  %v1106_v15 = vld [vmem:[%s2369_s6] sm:$0xff] (!%p482_p8)  ;;  %vm607_vm0 = vcmask (!%p482_p8), 1039360   ;;  %vm630_vm1 = vcmask (!%p482_p8), 1031168   ;;  %vm653_vm2 = vcmask (!%p482_p8), 1022976  }
  0x2e   : > { %485 = sbr.rel (%p482_p8) target bundleno = 670 (0x29e), region = 184  ;;  %s2176_s15 = sshll.u32 (!%p482_p8), %s488_s11, 4  ;;  %1719 = vmatprep.mubr.f32.mxu1 (!%p482_p8), %v1106_v15  ;;  %vm676_vm3 = vcmask (!%p482_p8), 1014784   ;;  %vm699_vm4 = vcmask (!%p482_p8), 1006592   ;;  %vm722_vm5 = vcmask (!%p482_p8), 998400   ;;  %vm745_vm6 = vcmask (!%p482_p8), 990208  }
  0x2f   : > { %s504_s16 = scalar_lea.vmem (!%p482_p8), [#allocation6], %s2176_s15  ;;  %s511_s17 = scalar_lea.vmem (!%p482_p8), [#allocation7], %s2176_s15  ;;  %vm1363_vm8 = vcmask (!%p482_p8), 0  }
  0x30   : > { %v940_v8 = vld [vmem:[%s504_s16] sm:$0xff] (!%p482_p8)  ;;  %v941_v9 = vld [vmem:[%s504_s16 + $0x8] sm:$0xff] (!%p482_p8)  ;;  %s2051_s19 = smov (!%p482_p8), 127   ;;  %s2052_s27 = smov (!%p482_p8), 125  }
  0x31   : > { %v944_v10 = vld [vmem:[%s511_s17] sm:$0xff] (!%p482_p8)  ;;  %v945_v11 = vld [vmem:[%s511_s17 + $0x8] sm:$0xff] (!%p482_p8)  ;;  %v1769_v14 = vpack.c.bf16 (!%p482_p8), %v941_v9, %v940_v8  ;;  %s2053_s20 = smov (!%p482_p8), 124   ;;  %s2054_s21 = smov (!%p482_p8), 123  }
  0x32   : > { %v1866_v12 = vpack.i.bf16 (!%p482_p8), %v944_v10, %v940_v8  ;;  %v1871_v13 = vpack.i.bf16 (!%p482_p8), %v945_v11, %v941_v9  ;;  %s2055_s22 = smov (!%p482_p8), 122   ;;  %s2056_s25 = smov (!%p482_p8), 121  }
  0x33   : > { %1770 = vmatprep.subr.bf16.mxu1 (!%p482_p8), %v1769_v14  ;;  %s490_s26 = scalar_lea.vmem (!%p482_p8), [#allocation4], %s2176_s15  ;;  %s497_s12 = scalar_lea.vmem (!%p482_p8), [#allocation5], %s2176_s15 }
  0x34   : > { %1867 = vrot.lane.b32.xlu1 (!%p482_p8), %v1866_v12, %s2050_s18  ;;  %1857 = vrot.lane.b32.xlu0 (!%p482_p8), %v1866_v12, %s2051_s19  ;;  %v580_v16 = vld [vmem:[%s490_s26 + $0x8] sm:$0xff] (!%p482_p8)  ;;  %v579_v18 = vld [vmem:[%s490_s26] sm:$0xff] (!%p482_p8)  ;;  %p565_p9 = scmp.lt.s32.totalorder (!%p482_p8), %s2040_s29, 1 }
  0x35   : > { %1772 = vmatpush3.bf16.msra.mxu1 %v1769_v14  ;;  %v584_v17 = vld [vmem:[%s497_s12 + $0x8] sm:$0xff]  ;;  %v583_v20 = vld [vmem:[%s497_s12] sm:$0xff]  ;;  %v1737_v22 = vpack.c.bf16 %v580_v16, %v579_v18 }
  0x36   : > { %v1931_v19 = vpack.i.bf16 %v584_v17, %v580_v16  ;;  %v1926_v21 = vpack.i.bf16 %v583_v20, %v579_v18  ;;  %s2380_s29 = smov (!%p565_p9, %s2040_s29), 1 }
  0x37   : > { %1738 = vmatprep.subr.bf16.mxu0 %v1737_v22  ;;  %s578_s12 = scalar_lea.vmem %s2371_s8, %s2380_s29 }
  0x38   : > { %1872 = vrot.lane.b32.xlu1 %v1871_v13, %s2050_s18  ;;  %1862 = vrot.lane.b32.xlu0 %v1871_v13, %s2051_s19 }
  0x39   : > { %1740 = vmatpush3.bf16.msra.mxu0 %v1737_v22  ;;  %v1107_v22 = vld [vmem:[%s2369_s6 + $0x8] sm:$0xff] }
  0x3c   : > { %1882 = vrot.lane.b32.xlu1 %v1871_v13, %s2052_s27  ;;  %1877 = vrot.lane.b32.xlu0 %v1866_v12, %s2052_s27 }
  0x40   : > { %1892 = vrot.lane.b32.xlu1 %v1871_v13, %s2053_s20  ;;  %1887 = vrot.lane.b32.xlu0 %v1866_v12, %s2053_s20 }
  0x44   : > { %1902 = vrot.lane.b32.xlu1 %v1871_v13, %s2054_s21  ;;  %1897 = vrot.lane.b32.xlu0 %v1866_v12, %s2054_s21 }
  0x48   : > { %1912 = vrot.lane.b32.xlu1 %v1871_v13, %s2055_s22  ;;  %1907 = vrot.lane.b32.xlu0 %v1866_v12, %s2055_s22 }
  0x4c   : > { %1922 = vrot.lane.b32.xlu1 %v1871_v13, %s2056_s25  ;;  %1917 = vrot.lane.b32.xlu0 %v1866_v12, %s2056_s25 }
  0x50   : > { %1932 = vrot.lane.b32.xlu1 %v1931_v19, %s2051_s19  ;;  %1927 = vrot.lane.b32.xlu0 %v1926_v21, %s2051_s19  ;;  %s1801_s19 = smul.u32 112, %s2380_s29 }
  0x54   : > { %1942 = vrot.lane.b32.xlu1 %v1931_v19, %s2050_s18  ;;  %1937 = vrot.lane.b32.xlu0 %v1926_v21, %s2050_s18 }
  0x58   : > { %1952 = vrot.lane.b32.xlu1 %v1931_v19, %s2052_s27  ;;  %1947 = vrot.lane.b32.xlu0 %v1926_v21, %s2052_s27 }
  0x5c   : > { %1962 = vrot.lane.b32.xlu1 %v1931_v19, %s2053_s20  ;;  %1957 = vrot.lane.b32.xlu0 %v1926_v21, %s2053_s20 }
  0x60   : > { %1972 = vrot.lane.b32.xlu1 %v1931_v19, %s2054_s21  ;;  %1967 = vrot.lane.b32.xlu0 %v1926_v21, %s2054_s21  ;;  %s2298_s21 = scalar_lea.vmem %s2370_s7, %s1801_s19 }
  0x64   : > { %1982 = vrot.lane.b32.xlu1 %v1931_v19, %s2055_s22  ;;  %1977 = vrot.lane.b32.xlu0 %v1926_v21, %s2055_s22 }
  0x68   : > { %1992 = vrot.lane.b32.xlu1 %v1931_v19, %s2056_s25  ;;  %1987 = vrot.lane.b32.xlu0 %v1926_v21, %s2056_s25 }
  0xa6   : > { %v1868_v23 = vpop.permute.xlu1 %1867  ;;  %v1858_v24 = vpop.permute.xlu0 %1857 }
  0xa7   : > { %v1870_v25 = vunpack.i.h.bf16 %v1868_v23  ;;  %v1869_v26 = vunpack.i.l.bf16 %v1868_v23  ;;  %v1860_v27 = vunpack.i.h.bf16 %v1858_v24  ;;  %v1859_v28 = vunpack.i.l.bf16 %v1858_v24  ;;  %v1108_v23 = vld [vmem:[%s2369_s6 + $0x10] sm:$0xff]  ;;  %v1109_v24 = vld [vmem:[%s2369_s6 + $0x18] sm:$0xff] }
  0xa9   : > { %v968_v35 = vsel %vm607_vm0, %v1859_v28, %v1860_v27  ;;  %v990_v37 = vsel %vm630_vm1, %v1869_v26, %v1870_v25  ;;  %v1110_v25 = vld [vmem:[%s2369_s6 + $0x20] sm:$0xff]  ;;  %v1111_v26 = vld [vmem:[%s2369_s6 + $0x28] sm:$0xff]  ;;  %v1112_v27 = vld [vmem:[%s2369_s6 + $0x30] sm:$0xff] }
  0xaa   : > { %v1873_v29 = vpop.permute.xlu1 %1872  ;;  %v1863_v30 = vpop.permute.xlu0 %1862  ;;  %v1113_v28 = vld [vmem:[%s2369_s6 + $0x38] sm:$0xff] }
  0xab   : > { %v1875_v31 = vunpack.i.h.bf16 %v1873_v29  ;;  %v1874_v32 = vunpack.i.l.bf16 %v1873_v29  ;;  %v1865_v33 = vunpack.i.h.bf16 %v1863_v30  ;;  %v1864_v34 = vunpack.i.l.bf16 %v1863_v30  ;;  %v1114_v29 = vld [vmem:[%s2369_s6 + $0x40] sm:$0xff] }
  0xad   : > { %v969_v36 = vsel %vm607_vm0, %v1864_v34, %v1865_v33  ;;  %v991_v38 = vsel %vm630_vm1, %v1874_v32, %v1875_v31 }
  0xae   : > { %v1773_v39 = vpack.c.bf16 %v969_v36, %v968_v35  ;;  %v1883_v40 = vpop.permute.xlu1 %1882  ;;  %v1878_v41 = vpop.permute.xlu0 %1877  ;;  %v1777_v46 = vpack.c.bf16 %v991_v38, %v990_v37  ;;  %v1115_v36 = vld [vmem:[%s2369_s6 + $0x48] sm:$0xff]  ;;  %v1116_v38 = vld [vmem:[%s2369_s6 + $0x50] sm:$0xff] }
  0xaf   : > { %v1885_v42 = vunpack.i.h.bf16 %v1883_v40  ;;  %v1884_v43 = vunpack.i.l.bf16 %v1883_v40  ;;  %v1880_v44 = vunpack.i.h.bf16 %v1878_v41  ;;  %v1879_v45 = vunpack.i.l.bf16 %v1878_v41 }
  0xb0   : > { %1774 = vmatprep.subr.bf16.mxu1 %v1773_v39 }
  0xb1   : > { %1776 = vmatpush3.bf16.msra.mxu1 %v1773_v39  ;;  %v1012_v47 = vsel %vm653_vm2, %v1879_v45, %v1880_v44  ;;  %v1013_v48 = vsel %vm653_vm2, %v1884_v43, %v1885_v42 }
  0xb2   : > { %1778 = vmatprep.subr.bf16.mxu1 %v1777_v46  ;;  %v1893_v49 = vpop.permute.xlu1 %1892  ;;  %v1888_v50 = vpop.permute.xlu0 %1887  ;;  %v1781_v51 = vpack.c.bf16 %v1013_v48, %v1012_v47  ;;  %v1117_v47 = vld [vmem:[%s2369_s6 + $0x58] sm:$0xff] }
  0xb3   : > { %v1895_v52 = vunpack.i.h.bf16 %v1893_v49  ;;  %v1894_v53 = vunpack.i.l.bf16 %v1893_v49  ;;  %v1890_v54 = vunpack.i.h.bf16 %v1888_v50  ;;  %v1889_v55 = vunpack.i.l.bf16 %v1888_v50 }
  0xb5   : > { %1780 = vmatpush3.bf16.msra.mxu1 %v1777_v46  ;;  %v1034_v56 = vsel %vm676_vm3, %v1889_v55, %v1890_v54  ;;  %v1035_v57 = vsel %vm676_vm3, %v1894_v53, %v1895_v52 }
  0xb6   : > { %1782 = vmatprep.subr.bf16.mxu1 %v1781_v51  ;;  %v1903_v58 = vpop.permute.xlu1 %1902  ;;  %v1898_v59 = vpop.permute.xlu0 %1897  ;;  %v1785_v60 = vpack.c.bf16 %v1035_v57, %v1034_v56 }
  0xb7   : > { %v1905_v61 = vunpack.i.h.bf16 %v1903_v58  ;;  %v1904_v62 = vunpack.i.l.bf16 %v1903_v58  ;;  %v1900_v63 = vunpack.i.h.bf16 %v1898_v59  ;;  %v1899_v0 = vunpack.i.l.bf16 %v1898_v59 }
  0xb9   : > { %1784 = vmatpush3.bf16.msra.mxu1 %v1781_v51  ;;  %v1056_v1 = vsel %vm699_vm4, %v1899_v0, %v1900_v63  ;;  %v1057_v2 = vsel %vm699_vm4, %v1904_v62, %v1905_v61 }
  0xba   : > { %1786 = vmatprep.subr.bf16.mxu1 %v1785_v60  ;;  %v1913_v3 = vpop.permute.xlu1 %1912  ;;  %v1908_v4 = vpop.permute.xlu0 %1907  ;;  %v1789_v5 = vpack.c.bf16 %v1057_v2, %v1056_v1 }
  0xbb   : > { %v1915_v6 = vunpack.i.h.bf16 %v1913_v3  ;;  %v1914_v7 = vunpack.i.l.bf16 %v1913_v3  ;;  %v1910_v8 = vunpack.i.h.bf16 %v1908_v4  ;;  %v1909_v9 = vunpack.i.l.bf16 %v1908_v4 }
  0xbd   : > { %1788 = vmatpush3.bf16.msra.mxu1 %v1785_v60  ;;  %v1078_v10 = vsel %vm722_vm5, %v1909_v9, %v1910_v8  ;;  %v1079_v11 = vsel %vm722_vm5, %v1914_v7, %v1915_v6 }
  0xbe   : > { %1790 = vmatprep.subr.bf16.mxu1 %v1789_v5  ;;  %v1923_v12 = vpop.permute.xlu1 %1922  ;;  %v1918_v13 = vpop.permute.xlu0 %1917  ;;  %v1793_v14 = vpack.c.bf16 %v1079_v11, %v1078_v10 }
  0xbf   : > { %v1925_v15 = vunpack.i.h.bf16 %v1923_v12  ;;  %v1924_v16 = vunpack.i.l.bf16 %v1923_v12  ;;  %v1920_v17 = vunpack.i.h.bf16 %v1918_v13  ;;  %v1919_v18 = vunpack.i.l.bf16 %v1918_v13 }
  0xc1   : > { %1792 = vmatpush3.bf16.msra.mxu1 %v1789_v5  ;;  %v1100_v19 = vsel %vm745_vm6, %v1919_v18, %v1920_v17  ;;  %v1101_v20 = vsel %vm745_vm6, %v1924_v16, %v1925_v15 }
  0xc2   : > { %1794 = vmatprep.subr.bf16.mxu1 %v1793_v14  ;;  %v1797_v21 = vpack.c.bf16 %v1101_v20, %v1100_v19  ;;  %v1933_v30 = vpop.permute.xlu1 %1932  ;;  %v1928_v33 = vpop.permute.xlu0 %1927 }
  0xc3   : > { %v1935_v31 = vunpack.i.h.bf16 %v1933_v30  ;;  %v1934_v32 = vunpack.i.l.bf16 %v1933_v30  ;;  %v1930_v34 = vunpack.i.h.bf16 %v1928_v33  ;;  %v1929_v35 = vunpack.i.l.bf16 %v1928_v33  ;;  %v753_v33 = vld [vmem:[%s2367_s4 + $0x8] sm:$0xff] }
  0xc5   : > { %1796 = vmatpush3.bf16.msra.mxu1 %v1793_v14  ;;  %v609_v37 = vsel %vm607_vm0, %v1934_v32, %v1935_v31  ;;  %v608_v40 = vsel %vm607_vm0, %v1929_v35, %v1930_v34  ;;  %v752_v32 = vld [vmem:[%s2367_s4] sm:$0xff]  ;;  %v754_v34 = vld [vmem:[%s2367_s4 + $0x10] sm:$0xff]  ;;  %v755_v35 = vld [vmem:[%s2367_s4 + $0x18] sm:$0xff] }
  0xc6   : > { %1798 = vmatprep.subr.bf16.mxu1 %v1797_v21  ;;  %v1943_v39 = vpop.permute.xlu1 %1942  ;;  %v1938_v43 = vpop.permute.xlu0 %1937  ;;  %v1741_v44 = vpack.c.bf16 %v609_v37, %v608_v40  ;;  %1675 = vmatprep.mubr.f32.mxu0 %v752_v32  ;;  %v757_v37 = vld [vmem:[%s2367_s4 + $0x28] sm:$0xff]  ;;  %v2057_v40 = vmov 0  }
  0xc7   : > { %v1945_v41 = vunpack.i.h.bf16 %v1943_v39  ;;  %v1944_v42 = vunpack.i.l.bf16 %v1943_v39  ;;  %v1940_v45 = vunpack.i.h.bf16 %v1938_v43  ;;  %v1939_v46 = vunpack.i.l.bf16 %v1938_v43  ;;  %v759_v39 = vld [vmem:[%s2367_s4 + $0x38] sm:$0xff]  ;;  %1997 = vset.pattern.permute.xlu1 %v2057_v40  ;;  %1996 = vset.pattern.permute.xlu0 %v2057_v40 }
  0xc8   : > { %1742 = vmatprep.subr.bf16.mxu0 %v1741_v44 }
  0xc9   : > { %1800 = vmatpush3.bf16.msra.mxu1 %v1797_v21  ;;  %v632_v48 = vsel %vm630_vm1, %v1944_v42, %v1945_v41  ;;  %1744 = vmatpush3.bf16.msra.mxu0 %v1741_v44  ;;  %v631_v50 = vsel %vm630_vm1, %v1939_v46, %v1940_v45 }
  0xca   : > { %v1953_v49 = vpop.permute.xlu1 %1952  ;;  %v1948_v53 = vpop.permute.xlu0 %1947  ;;  %v1745_v54 = vpack.c.bf16 %v632_v48, %v631_v50 }
  0xcb   : > { %v1955_v51 = vunpack.i.h.bf16 %v1953_v49  ;;  %v1954_v52 = vunpack.i.l.bf16 %v1953_v49  ;;  %v1950_v55 = vunpack.i.h.bf16 %v1948_v53  ;;  %v1949_v56 = vunpack.i.l.bf16 %v1948_v53 }
  0xcc   : > { %1720 = vmatmul.mubr.f32.vlgmr.msra.gmra.mrb[0].mxu1 %v1107_v22  ;;  %1746 = vmatprep.subr.bf16.mxu0 %v1745_v54 }
  0xcd   : > { %1722 = vmatprep.mubr.f32.mxu1 %v1108_v23  ;;  %v655_v57 = vsel %vm653_vm2, %v1954_v52, %v1955_v51  ;;  %1748 = vmatpush3.bf16.msra.mxu0 %v1745_v54  ;;  %v654_v59 = vsel %vm653_vm2, %v1949_v56, %v1950_v55 }
  0xce   : > { %v1963_v58 = vpop.permute.xlu1 %1962  ;;  %v1958_v62 = vpop.permute.xlu0 %1957  ;;  %v1749_v63 = vpack.c.bf16 %v655_v57, %v654_v59 }
  0xcf   : > { %v1965_v60 = vunpack.i.h.bf16 %v1963_v58  ;;  %v1964_v61 = vunpack.i.l.bf16 %v1963_v58  ;;  %v1960_v0 = vunpack.i.h.bf16 %v1958_v62  ;;  %v1959_v1 = vunpack.i.l.bf16 %v1958_v62 }
  0xd0   : > { %1723 = vmatmul.mubr.f32.gmra.mrb[2].mxu1 %v1109_v24  ;;  %1750 = vmatprep.subr.bf16.mxu0 %v1749_v63 }
  0xd1   : > { %1725 = vmatprep.mubr.f32.mxu1 %v1110_v25  ;;  %v678_v2 = vsel %vm676_vm3, %v1964_v61, %v1965_v60  ;;  %1752 = vmatpush3.bf16.msra.mxu0 %v1749_v63  ;;  %v677_v4 = vsel %vm676_vm3, %v1959_v1, %v1960_v0 }
  0xd2   : > { %v1973_v3 = vpop.permute.xlu1 %1972  ;;  %v1968_v7 = vpop.permute.xlu0 %1967  ;;  %v1753_v8 = vpack.c.bf16 %v678_v2, %v677_v4  ;;  %v1259_v2 = vlaneseq }
  0xd3   : > { %v1975_v5 = vunpack.i.h.bf16 %v1973_v3  ;;  %v1974_v6 = vunpack.i.l.bf16 %v1973_v3  ;;  %v1970_v9 = vunpack.i.h.bf16 %v1968_v7  ;;  %v1969_v10 = vunpack.i.l.bf16 %v1968_v7 }
  0xd4   : > { %1726 = vmatmul.mubr.f32.gmra.mrb[4].mxu1 %v1111_v26  ;;  %1754 = vmatprep.subr.bf16.mxu0 %v1753_v8 }
  0xd5   : > { %1728 = vmatprep.mubr.f32.mxu1 %v1112_v27  ;;  %v701_v11 = vsel %vm699_vm4, %v1974_v6, %v1975_v5  ;;  %1756 = vmatpush3.bf16.msra.mxu0 %v1753_v8  ;;  %v700_v13 = vsel %vm699_vm4, %v1969_v10, %v1970_v9  ;;  %v1260_v9 = vand.u32 127, %v1259_v2 }
  0xd6   : > { %v1983_v12 = vpop.permute.xlu1 %1982  ;;  %v1978_v16 = vpop.permute.xlu0 %1977  ;;  %v1757_v17 = vpack.c.bf16 %v701_v11, %v700_v13 }
  0xd7   : > { %v1985_v14 = vunpack.i.h.bf16 %v1983_v12  ;;  %v1984_v15 = vunpack.i.l.bf16 %v1983_v12  ;;  %v1980_v18 = vunpack.i.h.bf16 %v1978_v16  ;;  %v1979_v19 = vunpack.i.l.bf16 %v1978_v16 }
  0xd8   : > { %1729 = vmatmul.mubr.f32.gmra.mrb[6].mxu1 %v1113_v28  ;;  %1758 = vmatprep.subr.bf16.mxu0 %v1757_v17  ;;  %vm1264_vm7 = vcmp.lt.s32.totalorder %v1260_v9, 16 }
  0xd9   : > { %1731 = vmatprep.mubr.f32.mxu1 %v1114_v29  ;;  %v724_v20 = vsel %vm722_vm5, %v1984_v15, %v1985_v14  ;;  %1760 = vmatpush3.bf16.msra.mxu0 %v1757_v17  ;;  %v723_v22 = vsel %vm722_vm5, %v1979_v19, %v1980_v18 }
  0xda   : > { %v1993_v21 = vpop.permute.xlu1 %1992  ;;  %v1988_v25 = vpop.permute.xlu0 %1987  ;;  %v1761_v26 = vpack.c.bf16 %v724_v20, %v723_v22 }
  0xdb   : > { %v1995_v23 = vunpack.i.h.bf16 %v1993_v21  ;;  %v1994_v24 = vunpack.i.l.bf16 %v1993_v21  ;;  %v1990_v27 = vunpack.i.h.bf16 %v1988_v25  ;;  %v1989_v28 = vunpack.i.l.bf16 %v1988_v25 }
  0xdc   : > { %1732 = vmatmul.mubr.f32.gmra.mrb[8].mxu1 %v1115_v36  ;;  %1762 = vmatprep.subr.bf16.mxu0 %v1761_v26  ;;  %v756_v36 = vld [vmem:[%s2367_s4 + $0x20] sm:$0xff] }
  0xdd   : > { %1734 = vmatprep.mubr.f32.mxu1 %v1116_v38  ;;  %v747_v29 = vsel %vm745_vm6, %v1994_v24, %v1995_v23  ;;  %1764 = vmatpush3.bf16.msra.mxu0 %v1761_v26  ;;  %v746_v30 = vsel %vm745_vm6, %v1989_v28, %v1990_v27  ;;  %v758_v38 = vld [vmem:[%s2367_s4 + $0x30] sm:$0xff] }
  0xde   : > { %v1765_v31 = vpack.c.bf16 %v747_v29, %v746_v30 }
  0xe0   : > { %1735 = vmatmul.mubr.f32.gmra.mrb[10].mxu1 %v1117_v47  ;;  %1766 = vmatprep.subr.bf16.mxu0 %v1765_v31 }
  0xe1   : > { %1768 = vmatpush3.bf16.msra.mxu0 %v1765_v31 }
  0xe4   : > { %1676 = vmatmul.mubr.f32.vlgmr.msra.gmra.mrb[0].mxu0 %v753_v33 }
  0xe5   : > { %1678 = vmatprep.mubr.f32.mxu0 %v754_v34 }
  0xe8   : > { %1679 = vmatmul.mubr.f32.gmra.mrb[2].mxu0 %v755_v35 }
  0xe9   : > { %1681 = vmatprep.mubr.f32.mxu0 %v756_v36 }
  0xec   : > { %1682 = vmatmul.mubr.f32.gmra.mrb[4].mxu0 %v757_v37 }
  0xed   : > { %1684 = vmatprep.mubr.f32.mxu0 %v758_v38 }
  0xf0   : > { %1685 = vmatmul.mubr.f32.gmra.mrb[6].mxu0 %v759_v39 }
 0x19f   : > { %v1721_v41 = vpop.f32.mrb[0].mxu1 }
 0x1a0   : > { %v1200_v42 = vpop.f32.mrb[1].mxu1  ;;  %v1266_v44 = vmul.f32 %v1721_v41, %v1721_v41 }
 0x1a1   : > { %v1265_v47 = vmul.f32 %v1200_v42, %v1200_v42 }
 0x1a3   : > { %v1724_v43 = vpop.f32.mrb[2].mxu1 }
 0x1a4   : > { %v1268_v45 = vmul.f32 %v1724_v43, %v1724_v43  ;;  %v1210_v46 = vpop.f32.mrb[3].mxu1 }
 0x1a5   : > { %v1267_v48 = vmul.f32 %v1210_v46, %v1210_v46 }
 0x1a6   : > { %v1270_v49 = vadd.f32 %v1268_v45, %v1266_v44 }
 0x1a7   : > { %v1269_v50 = vadd.f32 %v1267_v48, %v1265_v47  ;;  %v1727_v51 = vpop.f32.mrb[4].mxu1  ;;  %v777_v48 = vld [vmem:[%s2368_s5 + $0x8] sm:$0xff] }
 0x1a8   : > { %v1272_v52 = vmax.f32 %v1270_v49, 1e-10  ;;  %v1220_v53 = vpop.f32.mrb[5].mxu1  ;;  %v1299_v56 = vmul.f32 %v1727_v51, %v1727_v51  ;;  %v778_v49 = vld [vmem:[%s2368_s5 + $0x10] sm:$0xff]  ;;  %v780_v51 = vld [vmem:[%s2368_s5 + $0x20] sm:$0xff] }
 0x1a9   : > { %v1271_v54 = vmax.f32 %v1269_v50, 1e-10  ;;  %v1298_v59 = vmul.f32 %v1220_v53, %v1220_v53  ;;  %v779_v50 = vld [vmem:[%s2368_s5 + $0x18] sm:$0xff]  ;;  %v781_v53 = vld [vmem:[%s2368_s5 + $0x28] sm:$0xff] }
 0x1aa   : > { %1998 = vlog2.f32 %v1272_v52  ;;  %v776_v52 = vld [vmem:[%s2368_s5] sm:$0xff] }
 0x1ab   : > { %2000 = vlog2.f32 %v1271_v54  ;;  %v1730_v55 = vpop.f32.mrb[6].mxu1  ;;  %v782_v54 = vld [vmem:[%s2368_s5 + $0x30] sm:$0xff] }
 0x1ac   : > { %v1301_v57 = vmul.f32 %v1730_v55, %v1730_v55  ;;  %v1230_v58 = vpop.f32.mrb[7].mxu1  ;;  %v783_v55 = vld [vmem:[%s2368_s5 + $0x38] sm:$0xff] }
 0x1ad   : > { %v1300_v60 = vmul.f32 %v1230_v58, %v1230_v58 }
 0x1ae   : > { %v1303_v61 = vadd.f32 %v1301_v57, %v1299_v56 }
 0x1af   : > { %v1302_v62 = vadd.f32 %v1300_v60, %v1298_v59  ;;  %v1733_v63 = vpop.f32.mrb[8].mxu1 }
 0x1b0   : > { %v1305_v0 = vmax.f32 %v1303_v61, 1e-10  ;;  %v1240_v1 = vpop.f32.mrb[9].mxu1  ;;  %v1331_v6 = vmul.f32 %v1733_v63, %v1733_v63 }
 0x1b1   : > { %v1304_v3 = vmax.f32 %v1302_v62, 1e-10  ;;  %v1330_v11 = vmul.f32 %v1240_v1, %v1240_v1 }
 0x1b2   : > { %2002 = vlog2.f32 %v1305_v0 }
 0x1b3   : > { %2004 = vlog2.f32 %v1304_v3  ;;  %v1736_v4 = vpop.f32.mrb[10].mxu1 }
 0x1b4   : > { %v1999_v5 = vpop.eup %1998  ;;  %v1333_v7 = vmul.f32 %v1736_v4, %v1736_v4  ;;  %v1250_v8 = vpop.f32.mrb[11].mxu1 }
 0x1b5   : > { %v2001_v10 = vpop.eup %2000  ;;  %v1332_v12 = vmul.f32 %v1250_v8, %v1250_v8  ;;  %v1276_v13 = vmul.f32 0.6931472, %v1999_v5 }
 0x1b6   : > { %v1335_v14 = vadd.f32 %v1333_v7, %v1331_v6  ;;  %v1274_v15 = vmul.f32 0.6931472, %v2001_v10 }
 0x1b7   : > { %v1334_v16 = vadd.f32 %v1332_v12, %v1330_v11  ;;  %v1278_v17 = vmul.f32 0.4342945, %v1276_v13  ;;  %v1677_v56 = vpop.f32.mrb[0].mxu0 }
 0x1b8   : > { %v1337_v18 = vmax.f32 %v1335_v14, 1e-10  ;;  %v1277_v19 = vmul.f32 0.4342945, %v1274_v15  ;;  %v890_v57 = vpop.f32.mrb[1].mxu0 }
 0x1b9   : > { %v1336_v20 = vmax.f32 %v1334_v16, 1e-10  ;;  %v1280_v21 = vmul.f32 10.0, %v1278_v17 }
 0x1ba   : > { %2006 = vlog2.f32 %v1337_v18  ;;  %v1279_v22 = vmul.f32 10.0, %v1277_v19 }
 0x1bb   : > { %2008 = vlog2.f32 %v1336_v20  ;;  %1580 = vst [vmem:[%s2298_s21 + $0x48] sm:$0xff] %v1280_v21  ;;  %v1287_v23 = vsel %vm1264_vm7, %v1280_v21, -1e+30  ;;  %v1680_v58 = vpop.f32.mrb[2].mxu0 }
 0x1bc   : > { %v2003_v24 = vpop.eup %2002  ;;  %1579 = vst [vmem:[%s2298_s21 + $0x40] sm:$0xff] %v1279_v22  ;;  %v1286_v25 = vsel %vm1264_vm7, %v1279_v22, -1e+30  ;;  %v900_v59 = vpop.f32.mrb[3].mxu0 }
 0x1bd   : > { %v2005_v26 = vpop.eup %2004  ;;  %v1288_v27 = vmax.f32 %v1286_v25, %v1287_v23  ;;  %v1309_v28 = vmul.f32 0.6931472, %v2003_v24 }
 0x1be   : > { %v1307_v29 = vmul.f32 0.6931472, %v2005_v26 }
 0x1bf   : > { %1289 = vmax.xlane.f32.xlu0 %v1288_v27  ;;  %v1311_v30 = vmul.f32 0.4342945, %v1309_v28  ;;  %v1683_v60 = vpop.f32.mrb[4].mxu0 }
 0x1c0   : > { %v1310_v31 = vmul.f32 0.4342945, %v1307_v29  ;;  %v910_v61 = vpop.f32.mrb[5].mxu0 }
 0x1c1   : > { %v1313_v32 = vmul.f32 10.0, %v1311_v30 }
 0x1c2   : > { %v1312_v33 = vmul.f32 10.0, %v1310_v31 }
 0x1c3   : > { %1582 = vst [vmem:[%s2298_s21 + $0x58] sm:$0xff] %v1313_v32  ;;  %v1318_v34 = vsel %vm1264_vm7, %v1313_v32, -1e+30  ;;  %v1686_v62 = vpop.f32.mrb[6].mxu0 }
 0x1c4   : > { %v2007_v35 = vpop.eup %2006  ;;  %1581 = vst [vmem:[%s2298_s21 + $0x50] sm:$0xff] %v1312_v33  ;;  %v1317_v36 = vsel %vm1264_vm7, %v1312_v33, -1e+30  ;;  %v920_v63 = vpop.f32.mrb[7].mxu0 }
 0x1c5   : > { %v2009_v37 = vpop.eup %2008  ;;  %v1319_v38 = vmax.f32 %v1317_v36, %v1318_v34  ;;  %v1341_v39 = vmul.f32 0.6931472, %v2007_v35 }
 0x1c6   : > { %v1339_v40 = vmul.f32 0.6931472, %v2009_v37 }
 0x1c7   : > { %1320 = vmax.xlane.f32.xlu1 %v1319_v38  ;;  %v1343_v41 = vmul.f32 0.4342945, %v1341_v39 }
 0x1c8   : > { %v1342_v42 = vmul.f32 0.4342945, %v1339_v40 }
 0x1c9   : > { %v1345_v43 = vmul.f32 10.0, %v1343_v41 }
 0x1ca   : > { %v1344_v44 = vmul.f32 10.0, %v1342_v42 }
 0x1cb   : > { %1584 = vst [vmem:[%s2298_s21 + $0x68] sm:$0xff] %v1345_v43  ;;  %v1350_v45 = vsel %vm1264_vm7, %v1345_v43, -1e+30 }
 0x1cc   : > { %1583 = vst [vmem:[%s2298_s21 + $0x60] sm:$0xff] %v1344_v44  ;;  %v1349_v46 = vsel %vm1264_vm7, %v1344_v44, -1e+30 }
 0x1cd   : > { %v1351_v47 = vmax.f32 %v1349_v46, %v1350_v45 }
 0x1cf   : > { %1352 = vmax.xlane.f32.xlu0 %v1351_v47 }
 0x1d8   : > { %791 = vperm.xlu1 %1997, %v777_v48  }
 0x1dc   : > { %796 = vperm.xlu1 %1997, %v778_v49  }
 0x1e0   : > { %801 = vperm.xlu1 %1997, %v779_v50  }
 0x1e4   : > { %806 = vperm.xlu1 %1997, %v780_v51  }
 0x1e5   : > { %786 = vperm.xlu0 %1996, %v776_v52  }
 0x1e8   : > { %811 = vperm.xlu1 %1997, %v781_v53  }
 0x1ec   : > { %816 = vperm.xlu1 %1997, %v782_v54  }
 0x1f0   : > { %821 = vperm.xlu1 %1997, %v783_v55  }
 0x24c   : > { %v1290_v0 = vpop.xlane.xlu0 %1289 }
 0x24d   : > { %v1291_v1 = vrot.slane %v1290_v0, 4 }
 0x24f   : > { %v1292_v2 = vmax.f32 %v1290_v0, %v1291_v1 }
 0x251   : > { %v1293_v3 = vrot.slane %v1292_v2, 2 }
 0x253   : > { %v1294_v4 = vmax.f32 %v1292_v2, %v1293_v3 }
 0x254   : > { %v1321_v5 = vpop.xlane.xlu1 %1320 }
 0x255   : > { %v1322_v6 = vrot.slane %v1321_v5, 4  ;;  %v1295_v7 = vrot.slane %v1294_v4, 1 }
 0x257   : > { %v1323_v8 = vmax.f32 %v1321_v5, %v1322_v6  ;;  %v1296_v9 = vmax.f32 %v1294_v4, %v1295_v7 }
 0x258   : > { %v792_v10 = vpop.permute.xlu1 %791 }
 0x259   : > { %v1324_v11 = vrot.slane %v1323_v8, 2  ;;  %1802 = vpush %v1296_v9  ;;  %v896_v12 = vadd.f32 %v1677_v56, %v792_v10 }
 0x25b   : > { %v1325_v13 = vmax.f32 %v1323_v8, %v1324_v11  ;;  %930 = vst [vmem:[%s2298_s21 + $0x8] sm:$0xff] %v896_v12 }
 0x25c   : > { %v1353_v14 = vpop.xlane.xlu0 %1352  ;;  %v797_v15 = vpop.permute.xlu1 %796 }
 0x25d   : > { %v1354_v16 = vrot.slane %v1353_v14, 4  ;;  %v1326_v17 = vrot.slane %v1325_v13, 1  ;;  %v901_v18 = vadd.f32 %v900_v59, %v797_v15 }
 0x25f   : > { %v1355_v19 = vmax.f32 %v1353_v14, %v1354_v16  ;;  %v1327_v20 = vmax.f32 %v1325_v13, %v1326_v17  ;;  %1573 = vst [vmem:[%s2298_s21 + $0x10] sm:$0xff] %v901_v18 }
 0x260   : > { %v802_v21 = vpop.permute.xlu1 %801 }
 0x261   : > { %v1356_v22 = vrot.slane %v1355_v19, 2  ;;  %1804 = vpush %v1327_v20  ;;  %v906_v23 = vadd.f32 %v1680_v58, %v802_v21 }
 0x263   : > { %v1357_v24 = vmax.f32 %v1355_v19, %v1356_v22  ;;  %1574 = vst [vmem:[%s2298_s21 + $0x18] sm:$0xff] %v906_v23 }
 0x264   : > { %v807_v25 = vpop.permute.xlu1 %806  ;;  %v787_v26 = vpop.permute.xlu0 %786 }
 0x265   : > { %v1358_v27 = vrot.slane %v1357_v24, 1  ;;  %v911_v28 = vadd.f32 %v910_v61, %v807_v25  ;;  %v891_v29 = vadd.f32 %v890_v57, %v787_v26 }
 0x267   : > { %v1359_v30 = vmax.f32 %v1357_v24, %v1358_v27  ;;  %1575 = vst [vmem:[%s2298_s21 + $0x20] sm:$0xff] %v911_v28  ;;  %929 = vst [vmem:[%s2298_s21] sm:$0xff] %v891_v29 }
 0x268   : > { %v812_v31 = vpop.permute.xlu1 %811 }
 0x269   : > { %1806 = vpush %v1359_v30  ;;  %v916_v32 = vadd.f32 %v1683_v60, %v812_v31 }
 0x26b   : > { %1576 = vst [vmem:[%s2298_s21 + $0x28] sm:$0xff] %v916_v32 }
 0x26c   : > { %v817_v33 = vpop.permute.xlu1 %816 }
 0x26d   : > { %v921_v34 = vadd.f32 %v920_v63, %v817_v33 }
 0x26f   : > { %1577 = vst [vmem:[%s2298_s21 + $0x30] sm:$0xff] %v921_v34 }
 0x270   : > { %v822_v35 = vpop.permute.xlu1 %821 }
 0x271   : > { %v926_v36 = vadd.f32 %v1686_v62, %v822_v35 }
 0x273   : > { %1578 = vst [vmem:[%s2298_s21 + $0x38] sm:$0xff] %v926_v36 }
 0x28a   : > { %s1803_s23 = spop %1802 }
 0x292   : > { %s1805_s24 = spop %1804 }
 0x293   : > { %s1329_s13 = smax.f32 %s1805_s24, %s1803_s23 }
 0x29a   : > { %s1807_s11 = spop %1806 }
 0x29b   : > { %s1361_s15 = smax.f32 %s1807_s11, %s1329_s13 }
 0x29c   : > { %v1362_v37 = vstv %s1361_s15 }
 0x29d   : > { %1364 = vst.msk [vmem:[%s578_s12] sm:$0x1] %vm1363_vm8, %v1362_v37 }
 0x29e PF: > { %s19_s9 = sadd.s32 1, %s2048_s9   ;;  %s2373_s27 = smov %s2036_s28 }
 0x29f   : > { %p16_p10 = scmp.ge.s32.totalorder %s19_s9, 4   ;;  %s2374_s28 = smov %s2142_s14 }
 0x2a0   : > { %s2375_s29 = smov %s2044_s30  ;;  %s2376_s30 = smov %s2378_s10 }
 0x2a1   :  { %18 = sbr.rel (!%p16_p10) target bundleno = 3 (0x3), region = 277 }

</bundles_post_ra>
